<compile_context>
chip_gen: v7x
topology: tpu7x:2x2x1
jax: 0.10.0
libtpu: 0.0.40
codegen_flags: <defaults>
</compile_context>

<pallas_src>
import math
import functools

import jax
import jax.numpy as jnp
from jax import lax
from jax.experimental import pallas as pl
from jax.experimental.pallas import tpu as pltpu

_LANE = 128


# ---------------------------------------------------------------------------
# Fused kernel: posenc'd input -> nlayers x TransformerEncoderLayer -> mean pool
# ---------------------------------------------------------------------------
def fused_transformer_kernel(x0_ref, bid_col_ref, bid_row_ref, pad_row_ref,
                             mat_ref, vec_ref, o_ref, *,
                             nhead, nhid, seq_len, nbatch, eps):
    f32 = jnp.float32
    bf16 = jnp.bfloat16

    x = x0_ref[...]                          # (BS, D) f32 — embedding*sqrt(D)+PE
    BS, D = x.shape
    hd = D // nhead
    nlayers = mat_ref.shape[0]

    # Attention "keep" mask, built in-kernel from tiny vectors:
    #   keep[q, k] = (same packed sequence) AND (key k is not padded)
    keep = (bid_col_ref[...] == bid_row_ref[...]) & (pad_row_ref[...] < 0.5)  # (BS,BS)

    for l in range(nlayers):                 # static unroll; weights co-reside in VMEM
        mats = mat_ref[l]                    # (R, 128) bf16
        vecs = vec_ref[l]                    # (8, 128) f32

        wqkv = mats[0:D, :]                  # (D, 128) = [wq·1/√hd | wk | wv | 0]
        wo = mats[D:2 * D, 0:D]              # (D, D)
        w1 = mats[D:2 * D, D:D + nhid]       # (D, nhid)
        w2 = mats[2 * D:2 * D + nhid, 0:D]   # (nhid, D)

        b_qkv = vecs[0:1, :]                 # (1, 128)  [bq·1/√hd | bk | bv | 0]
        b_o = vecs[1:2, 0:D]
        g1, be1 = vecs[2:3, 0:D], vecs[3:4, 0:D]
        bf1 = vecs[4:5, 0:nhid]
        bf2 = vecs[5:6, 0:D]
        g2, be2 = vecs[6:7, 0:D], vecs[7:8, 0:D]

        # ---- fused QKV projection: one lane-dense bf16 MXU pass (N = 128) ----
        qkv = jnp.dot(x.astype(bf16), wqkv, preferred_element_type=f32) + b_qkv

        # ---- per-head attention (static lane slices of the fused projection) ----
        ctx_parts = []
        for h in range(nhead):
            qh = qkv[:, h * hd:(h + 1) * hd].astype(bf16)
            kh = qkv[:, D + h * hd:D + (h + 1) * hd].astype(bf16)
            vh = qkv[:, 2 * D + h * hd:2 * D + (h + 1) * hd].astype(bf16)

            s = lax.dot_general(qh, kh, (((1,), (1,)), ((), ())),
                                preferred_element_type=f32)          # (BS, BS)
            s = jnp.where(keep, s, -1e9)
            s = s - jnp.max(s, axis=-1, keepdims=True)
            p = jnp.exp(s)
            p = p * pl.reciprocal(jnp.sum(p, axis=-1, keepdims=True), approx=True)
            ctx_parts.append(jnp.dot(p.astype(bf16), vh,
                                     preferred_element_type=f32))    # (BS, hd)
        ctx = jnp.concatenate(ctx_parts, axis=-1)                    # (BS, D)

        # ---- output projection: one K=D matmul, no cross-head reduction ----
        attn = jnp.dot(ctx.astype(bf16), wo, preferred_element_type=f32) + b_o

        # ---- residual + LayerNorm 1 ----
        x1 = x + attn
        mu = jnp.mean(x1, axis=-1, keepdims=True)
        var = jnp.mean(jnp.square(x1 - mu), axis=-1, keepdims=True)
        x1 = (x1 - mu) * lax.rsqrt(var + eps) * g1 + be1

        # ---- feed-forward (ReLU) ----
        h1 = jnp.dot(x1.astype(bf16), w1, preferred_element_type=f32) + bf1
        h1 = jnp.maximum(h1, 0.0)
        ff = jnp.dot(h1.astype(bf16), w2, preferred_element_type=f32) + bf2

        # ---- residual + LayerNorm 2 ----
        x2 = x1 + ff
        mu = jnp.mean(x2, axis=-1, keepdims=True)
        var = jnp.mean(jnp.square(x2 - mu), axis=-1, keepdims=True)
        x = (x2 - mu) * lax.rsqrt(var + eps) * g2 + be2              # feeds next layer

    # ---- mean pooling over all S positions per sequence (pads included, as torch) ----
    pool = jnp.where(
        lax.broadcasted_iota(jnp.int32, (nbatch, BS), 0) == bid_row_ref[...],
        1.0 / seq_len, 0.0).astype(f32)                              # (B, BS)
    o_ref[...] = jnp.dot(pool, x, preferred_element_type=f32).astype(o_ref.dtype)


# ---------------------------------------------------------------------------
# pallas_call wrapper
# ---------------------------------------------------------------------------
def fused_transformer_forward(x0, bid_col, bid_row, pad_row, mat_slab, vec_slab,
                              *, nbatch, seq_len, nhead, nhid):
    BS, D = x0.shape
    args = (x0, bid_col, bid_row, pad_row, mat_slab, vec_slab)

    def fixed(arr):                       # whole array as a single VMEM block
        nd = arr.ndim
        return pl.BlockSpec(arr.shape, lambda i, _nd=nd: (0,) * _nd)

    return pl.pallas_call(
        functools.partial(fused_transformer_kernel, nhead=nhead, nhid=nhid,
                          seq_len=seq_len, nbatch=nbatch, eps=1e-5),
        out_shape=jax.ShapeDtypeStruct((nbatch, D), jnp.float32),
        grid=(1,),
        in_specs=[fixed(a) for a in args],
        out_specs=pl.BlockSpec((nbatch, D), lambda i: (0, 0)),
        compiler_params=pltpu.CompilerParams(
            dimension_semantics=("arbitrary",),
            vmem_limit_bytes=32 * 1024 * 1024),   # explicit budget; safe on v5e/v6e/v7x
    )(*args)


# ---------------------------------------------------------------------------
# Parameters (logical) + offline packing / folding
# ---------------------------------------------------------------------------
def make_positional_encoding(max_len, d_model):
    position = jnp.arange(max_len, dtype=jnp.float32)[:, None]
    div_term = jnp.exp(jnp.arange(0, d_model, 2, dtype=jnp.float32)
                       * (-math.log(10000.0) / d_model))
    pe = jnp.zeros((max_len, d_model), dtype=jnp.float32)
    pe = pe.at[:, 0::2].set(jnp.sin(position * div_term))
    pe = pe.at[:, 1::2].set(jnp.cos(position * div_term))
    return pe


def init_params(key, ntoken, ninp, nhead, nhid, nlayers, max_len=64):
    """Logical parameters; linear weights stored [in, out] (PyTorch stores [out, in])."""
    keys = jax.random.split(key, 1 + nlayers)
    layers = []
    for l in range(nlayers):
        k = jax.random.split(keys[1 + l], 6)
        layers.append(dict(
            wq=jax.random.normal(k[0], (ninp, ninp), jnp.float32) * 0.02,
            wk=jax.random.normal(k[1], (ninp, ninp), jnp.float32) * 0.02,
            wv=jax.random.normal(k[2], (ninp, ninp), jnp.float32) * 0.02,
            bq=jnp.zeros((ninp,), jnp.float32),
            bk=jnp.zeros((ninp,), jnp.float32),
            bv=jnp.zeros((ninp,), jnp.float32),
            wo=jax.random.normal(k[3], (ninp, ninp), jnp.float32) * 0.02,
            bo=jnp.zeros((ninp,), jnp.float32),
            g1=jnp.ones((ninp,), jnp.float32), be1=jnp.zeros((ninp,), jnp.float32),
            w1=jax.random.normal(k[4], (ninp, nhid), jnp.float32) * 0.02,
            bf1=jnp.zeros((nhid,), jnp.float32),
            w2=jax.random.normal(k[5], (nhid, ninp), jnp.float32) * 0.02,
            bf2=jnp.zeros((ninp,), jnp.float32),
            g2=jnp.ones((ninp,), jnp.float32), be2=jnp.zeros((ninp,), jnp.float32),
        ))
    return dict(
        embedding=jax.random.normal(keys[0], (ntoken, ninp), jnp.float32) * 0.02,
        pe=make_positional_encoding(max_len, ninp),
        layers=layers,
        nhead=nhead,
    )


def pack_params(params):
    """Fold constants and pack every layer's params into two lane-dense slabs."""
    nhead = params['nhead']
    emb = params['embedding']
    D = emb.shape[1]
    hd = D // nhead
    layers = params['layers']
    nhid = layers[0]['w1'].shape[1]
    inv_sqrt_hd = 1.0 / math.sqrt(hd)

    assert 3 * D <= _LANE and D + nhid <= _LANE, "slab layout assumes small D/nhid"
    R = -(-(2 * D + nhid) // 8) * 8            # rows per layer, sublane-padded

    mats, vecs = [], []
    for lw in layers:
        m = jnp.zeros((R, _LANE), jnp.float32)
        m = m.at[0:D, 0:D].set(lw['wq'] * inv_sqrt_hd)      # fold 1/sqrt(hd) into q
        m = m.at[0:D, D:2 * D].set(lw['wk'])
        m = m.at[0:D, 2 * D:3 * D].set(lw['wv'])
        m = m.at[D:2 * D, 0:D].set(lw['wo'])
        m = m.at[D:2 * D, D:D + nhid].set(lw['w1'])
        m = m.at[2 * D:2 * D + nhid, 0:D].set(lw['w2'])

        v = jnp.zeros((8, _LANE), jnp.float32)
        v = v.at[0, 0:D].set(lw['bq'] * inv_sqrt_hd)
        v = v.at[0, D:2 * D].set(lw['bk'])
        v = v.at[0, 2 * D:3 * D].set(lw['bv'])
        v = v.at[1, 0:D].set(lw['bo'])
        v = v.at[2, 0:D].set(lw['g1'])
        v = v.at[3, 0:D].set(lw['be1'])
        v = v.at[4, 0:nhid].set(lw['bf1'])
        v = v.at[5, 0:D].set(lw['bf2'])
        v = v.at[6, 0:D].set(lw['g2'])
        v = v.at[7, 0:D].set(lw['be2'])
        mats.append(m)
        vecs.append(v)

    return dict(
        emb=emb * math.sqrt(D),                      # fold sqrt(ninp) into the table
        pe=params['pe'],
        mat=jnp.stack(mats, axis=0).astype(jnp.bfloat16),   # (L, R, 128) bf16
        vec=jnp.stack(vecs, axis=0),                          # (L, 8, 128) f32
        nhead=nhead, nhid=nhid,
    )


# ---------------------------------------------------------------------------
# Full forward (plain-JAX glue around the single fused kernel)
# ---------------------------------------------------------------------------
def node_text_transformer_forward(src, key_padding_mask, packed):
    """src: int32 (B, S) token ids; key_padding_mask: bool (B, S), True = pad."""
    B, S = src.shape
    BS = B * S

    # embedding*sqrt(ninp) (folded into the table) + positional encoding
    x0 = (jnp.take(packed['emb'], src.reshape(-1), axis=0)
          + jnp.tile(packed['pe'][:S], (B, 1))).astype(jnp.float32)      # (BS, D)

    batch_ids = jnp.repeat(jnp.arange(B, dtype=jnp.int32), S)            # (BS,)
    bid_col = batch_ids.reshape(BS, 1)                                   # query-side ids
    bid_row = batch_ids.reshape(1, BS)                                   # key-side ids
    pad_row = key_padding_mask.reshape(1, BS).astype(jnp.float32)        # 1.0 = padded key

    return fused_transformer_forward(
        x0, bid_col, bid_row, pad_row, packed['mat'], packed['vec'],
        nbatch=B, seq_len=S, nhead=packed['nhead'], nhid=packed['nhid'])


# ---------------------------------------------------------------------------
if __name__ == "__main__":
    ntoken, ninp, nhead, nhid, nlayers = 50, 32, 4, 64, 2
    B, S = 2, 8

    root = jax.random.PRNGKey(0)
    pkey, skey = jax.random.split(root)

    params = init_params(pkey, ntoken, ninp, nhead, nhid, nlayers, max_len=S)
    packed = pack_params(params)

    src = jax.random.randint(skey, (B, S), 0, ntoken, dtype=jnp.int32)
    key_padding_mask = jnp.array(
        [[False] * S,
         [False] * (S - 2) + [True] * 2])      # second sequence has 2 padded keys

    out = node_text_transformer_forward(src, key_padding_mask, packed)
    out = jax.block_until_ready(out)
    assert out.shape == (B, ninp), out.shape
    assert not bool(jnp.isnan(out).any())
    print("KERNEL_OK")
</pallas_src>

<mosaic_0001>
module attributes {stable_mosaic.version = 11 : i64} {
  func.func @fused_transformer_kernel(%arg0: i32, %arg1: memref<16x32xf32, #tpu.memory_space<vmem>>, %arg2: memref<16x1xi32, #tpu.memory_space<vmem>>, %arg3: memref<1x16xi32, #tpu.memory_space<vmem>>, %arg4: memref<1x16xf32, #tpu.memory_space<vmem>>, %arg5: memref<2x128x128xbf16, #tpu.memory_space<vmem>>, %arg6: memref<2x8x128xf32, #tpu.memory_space<vmem>>, %arg7: memref<2x32xf32, #tpu.memory_space<vmem>>) attributes {dimension_semantics = [#tpu.dimension_semantics<arbitrary>], iteration_bounds = array<i64: 1>, scalar_prefetch = 0 : i64, scratch_operands = 0 : i64, tpu.core_type = #tpu.core_type<tc>, window_params = [{pipeline_mode = #tpu.pipeline_mode<synchronous>, transform_indices = @transform_0, window_bounds = array<i64: 16, 32>}, {pipeline_mode = #tpu.pipeline_mode<synchronous>, transform_indices = @transform_1, window_bounds = array<i64: 16, 1>}, {pipeline_mode = #tpu.pipeline_mode<synchronous>, transform_indices = @transform_2, window_bounds = array<i64: 1, 16>}, {pipeline_mode = #tpu.pipeline_mode<synchronous>, transform_indices = @transform_3, window_bounds = array<i64: 1, 16>}, {pipeline_mode = #tpu.pipeline_mode<synchronous>, transform_indices = @transform_4, window_bounds = array<i64: 2, 128, 128>}, {pipeline_mode = #tpu.pipeline_mode<synchronous>, transform_indices = @transform_5, window_bounds = array<i64: 2, 8, 128>}, {pipeline_mode = #tpu.pipeline_mode<synchronous>, transform_indices = @transform_6, window_bounds = array<i64: 2, 32>}]} {
    %c0 = arith.constant 0 : index
    %c0_0 = arith.constant 0 : index
    %0 = vector.load %arg1[%c0, %c0_0] : memref<16x32xf32, #tpu.memory_space<vmem>>, vector<16x32xf32>
    %c0_1 = arith.constant 0 : index
    %c0_2 = arith.constant 0 : index
    %1 = vector.load %arg2[%c0_1, %c0_2] : memref<16x1xi32, #tpu.memory_space<vmem>>, vector<16x1xi32>
    %c0_3 = arith.constant 0 : index
    %c0_4 = arith.constant 0 : index
    %2 = vector.load %arg3[%c0_3, %c0_4] : memref<1x16xi32, #tpu.memory_space<vmem>>, vector<1x16xi32>
    %3 = vector.broadcast %1 : vector<16x1xi32> to vector<16x16xi32>
    %4 = vector.broadcast %2 : vector<1x16xi32> to vector<16x16xi32>
    %5 = arith.cmpi eq, %3, %4 : vector<16x16xi32>
    %c0_5 = arith.constant 0 : index
    %c0_6 = arith.constant 0 : index
    %6 = vector.load %arg4[%c0_5, %c0_6] : memref<1x16xf32, #tpu.memory_space<vmem>>, vector<1x16xf32>
    %cst = arith.constant 5.000000e-01 : f32
    %7 = vector.broadcast %cst : f32 to vector<1x16xf32>
    %8 = arith.cmpf olt, %6, %7 : vector<1x16xf32>
    %9 = vector.broadcast %8 : vector<1x16xi1> to vector<16x16xi1>
    %10 = arith.andi %5, %9 : vector<16x16xi1>
    %c0_7 = arith.constant 0 : index
    %c0_8 = arith.constant 0 : index
    %c0_9 = arith.constant 0 : index
    %11 = vector.load %arg5[%c0_7, %c0_8, %c0_9] : memref<2x128x128xbf16, #tpu.memory_space<vmem>>, vector<1x128x128xbf16>
    %12 = vector.shape_cast %11 : vector<1x128x128xbf16> to vector<128x128xbf16>
    %c0_10 = arith.constant 0 : index
    %c0_11 = arith.constant 0 : index
    %c0_12 = arith.constant 0 : index
    %13 = vector.load %arg6[%c0_10, %c0_11, %c0_12] : memref<2x8x128xf32, #tpu.memory_space<vmem>>, vector<1x8x128xf32>
    %14 = vector.shape_cast %13 : vector<1x8x128xf32> to vector<8x128xf32>
    %15 = vector.extract_strided_slice %12 {offsets = [0, 0], sizes = [32, 128], strides = [1, 1]} : vector<128x128xbf16> to vector<32x128xbf16>
    %16 = vector.extract_strided_slice %12 {offsets = [32, 0], sizes = [32, 32], strides = [1, 1]} : vector<128x128xbf16> to vector<32x32xbf16>
    %17 = vector.extract_strided_slice %12 {offsets = [32, 32], sizes = [32, 64], strides = [1, 1]} : vector<128x128xbf16> to vector<32x64xbf16>
    %18 = vector.extract_strided_slice %12 {offsets = [64, 0], sizes = [64, 32], strides = [1, 1]} : vector<128x128xbf16> to vector<64x32xbf16>
    %19 = vector.extract_strided_slice %14 {offsets = [0, 0], sizes = [1, 128], strides = [1, 1]} : vector<8x128xf32> to vector<1x128xf32>
    %20 = vector.extract_strided_slice %14 {offsets = [1, 0], sizes = [1, 32], strides = [1, 1]} : vector<8x128xf32> to vector<1x32xf32>
    %21 = vector.extract_strided_slice %14 {offsets = [2, 0], sizes = [1, 32], strides = [1, 1]} : vector<8x128xf32> to vector<1x32xf32>
    %22 = vector.extract_strided_slice %14 {offsets = [3, 0], sizes = [1, 32], strides = [1, 1]} : vector<8x128xf32> to vector<1x32xf32>
    %23 = vector.extract_strided_slice %14 {offsets = [4, 0], sizes = [1, 64], strides = [1, 1]} : vector<8x128xf32> to vector<1x64xf32>
    %24 = vector.extract_strided_slice %14 {offsets = [5, 0], sizes = [1, 32], strides = [1, 1]} : vector<8x128xf32> to vector<1x32xf32>
    %25 = vector.extract_strided_slice %14 {offsets = [6, 0], sizes = [1, 32], strides = [1, 1]} : vector<8x128xf32> to vector<1x32xf32>
    %26 = vector.extract_strided_slice %14 {offsets = [7, 0], sizes = [1, 32], strides = [1, 1]} : vector<8x128xf32> to vector<1x32xf32>
    %27 = arith.truncf %0 : vector<16x32xf32> to vector<16x32xbf16>
    %cst_13 = arith.constant dense<0.000000e+00> : vector<16x128xf32>
    %28 = tpu.matmul %27, %15, %cst_13 {dimension_numbers = #tpu.dot_dimension_numbers<[1], [0], [0], [1], [0, 0, 1, 1], [], []>} : vector<16x32xbf16>, vector<32x128xbf16>, vector<16x128xf32> -> vector<16x128xf32>
    %29 = vector.broadcast %19 : vector<1x128xf32> to vector<16x128xf32>
    %30 = arith.addf %28, %29 : vector<16x128xf32>
    %31 = vector.extract_strided_slice %30 {offsets = [0, 0], sizes = [16, 8], strides = [1, 1]} : vector<16x128xf32> to vector<16x8xf32>
    %32 = arith.truncf %31 : vector<16x8xf32> to vector<16x8xbf16>
    %33 = vector.extract_strided_slice %30 {offsets = [0, 32], sizes = [16, 8], strides = [1, 1]} : vector<16x128xf32> to vector<16x8xf32>
    %34 = arith.truncf %33 : vector<16x8xf32> to vector<16x8xbf16>
    %35 = vector.extract_strided_slice %30 {offsets = [0, 64], sizes = [16, 8], strides = [1, 1]} : vector<16x128xf32> to vector<16x8xf32>
    %36 = arith.truncf %35 : vector<16x8xf32> to vector<16x8xbf16>
    %cst_14 = arith.constant dense<0.000000e+00> : vector<16x16xf32>
    %37 = tpu.matmul %32, %34, %cst_14 {dimension_numbers = #tpu.dot_dimension_numbers<[1], [1], [0], [0], [0, 0, 1, 0], [], []>} : vector<16x8xbf16>, vector<16x8xbf16>, vector<16x16xf32> -> vector<16x16xf32>
    %cst_15 = arith.constant -1.000000e+09 : f32
    %38 = vector.broadcast %cst_15 : f32 to vector<16x16xf32>
    %39 = arith.select %10, %37, %38 : vector<16x16xi1>, vector<16x16xf32>
    %cst_16 = arith.constant dense<0xFF800000> : vector<16xf32>
    %40 = vector.multi_reduction <maximumf>, %39, %cst_16 [1] : vector<16x16xf32> to vector<16xf32>
    %41 = vector.shape_cast %40 : vector<16xf32> to vector<16x1xf32>
    %42 = vector.broadcast %41 : vector<16x1xf32> to vector<16x16xf32>
    %43 = arith.subf %39, %42 : vector<16x16xf32>
    %44 = math.exp %43 : vector<16x16xf32>
    %cst_17 = arith.constant dense<0.000000e+00> : vector<16xf32>
    %45 = vector.multi_reduction <add>, %44, %cst_17 [1] : vector<16x16xf32> to vector<16xf32>
    %46 = vector.shape_cast %45 : vector<16xf32> to vector<16x1xf32>
    %47 = tpu.reciprocal %46 {approx = true} : vector<16x1xf32> -> vector<16x1xf32>
    %48 = vector.broadcast %47 : vector<16x1xf32> to vector<16x16xf32>
    %49 = arith.mulf %44, %48 : vector<16x16xf32>
    %50 = arith.truncf %49 : vector<16x16xf32> to vector<16x16xbf16>
    %cst_18 = arith.constant dense<0.000000e+00> : vector<16x8xf32>
    %51 = tpu.matmul %50, %36, %cst_18 {dimension_numbers = #tpu.dot_dimension_numbers<[1], [0], [0], [1], [0, 0, 1, 1], [], []>} : vector<16x16xbf16>, vector<16x8xbf16>, vector<16x8xf32> -> vector<16x8xf32>
    %52 = vector.extract_strided_slice %30 {offsets = [0, 8], sizes = [16, 8], strides = [1, 1]} : vector<16x128xf32> to vector<16x8xf32>
    %53 = arith.truncf %52 : vector<16x8xf32> to vector<16x8xbf16>
    %54 = vector.extract_strided_slice %30 {offsets = [0, 40], sizes = [16, 8], strides = [1, 1]} : vector<16x128xf32> to vector<16x8xf32>
    %55 = arith.truncf %54 : vector<16x8xf32> to vector<16x8xbf16>
    %56 = vector.extract_strided_slice %30 {offsets = [0, 72], sizes = [16, 8], strides = [1, 1]} : vector<16x128xf32> to vector<16x8xf32>
    %57 = arith.truncf %56 : vector<16x8xf32> to vector<16x8xbf16>
    %cst_19 = arith.constant dense<0.000000e+00> : vector<16x16xf32>
    %58 = tpu.matmul %53, %55, %cst_19 {dimension_numbers = #tpu.dot_dimension_numbers<[1], [1], [0], [0], [0, 0, 1, 0], [], []>} : vector<16x8xbf16>, vector<16x8xbf16>, vector<16x16xf32> -> vector<16x16xf32>
    %cst_20 = arith.constant -1.000000e+09 : f32
    %59 = vector.broadcast %cst_20 : f32 to vector<16x16xf32>
    %60 = arith.select %10, %58, %59 : vector<16x16xi1>, vector<16x16xf32>
    %cst_21 = arith.constant dense<0xFF800000> : vector<16xf32>
    %61 = vector.multi_reduction <maximumf>, %60, %cst_21 [1] : vector<16x16xf32> to vector<16xf32>
    %62 = vector.shape_cast %61 : vector<16xf32> to vector<16x1xf32>
    %63 = vector.broadcast %62 : vector<16x1xf32> to vector<16x16xf32>
    %64 = arith.subf %60, %63 : vector<16x16xf32>
    %65 = math.exp %64 : vector<16x16xf32>
    %cst_22 = arith.constant dense<0.000000e+00> : vector<16xf32>
    %66 = vector.multi_reduction <add>, %65, %cst_22 [1] : vector<16x16xf32> to vector<16xf32>
    %67 = vector.shape_cast %66 : vector<16xf32> to vector<16x1xf32>
    %68 = tpu.reciprocal %67 {approx = true} : vector<16x1xf32> -> vector<16x1xf32>
    %69 = vector.broadcast %68 : vector<16x1xf32> to vector<16x16xf32>
    %70 = arith.mulf %65, %69 : vector<16x16xf32>
    %71 = arith.truncf %70 : vector<16x16xf32> to vector<16x16xbf16>
    %cst_23 = arith.constant dense<0.000000e+00> : vector<16x8xf32>
    %72 = tpu.matmul %71, %57, %cst_23 {dimension_numbers = #tpu.dot_dimension_numbers<[1], [0], [0], [1], [0, 0, 1, 1], [], []>} : vector<16x16xbf16>, vector<16x8xbf16>, vector<16x8xf32> -> vector<16x8xf32>
    %73 = vector.extract_strided_slice %30 {offsets = [0, 16], sizes = [16, 8], strides = [1, 1]} : vector<16x128xf32> to vector<16x8xf32>
    %74 = arith.truncf %73 : vector<16x8xf32> to vector<16x8xbf16>
    %75 = vector.extract_strided_slice %30 {offsets = [0, 48], sizes = [16, 8], strides = [1, 1]} : vector<16x128xf32> to vector<16x8xf32>
    %76 = arith.truncf %75 : vector<16x8xf32> to vector<16x8xbf16>
    %77 = vector.extract_strided_slice %30 {offsets = [0, 80], sizes = [16, 8], strides = [1, 1]} : vector<16x128xf32> to vector<16x8xf32>
    %78 = arith.truncf %77 : vector<16x8xf32> to vector<16x8xbf16>
    %cst_24 = arith.constant dense<0.000000e+00> : vector<16x16xf32>
    %79 = tpu.matmul %74, %76, %cst_24 {dimension_numbers = #tpu.dot_dimension_numbers<[1], [1], [0], [0], [0, 0, 1, 0], [], []>} : vector<16x8xbf16>, vector<16x8xbf16>, vector<16x16xf32> -> vector<16x16xf32>
    %cst_25 = arith.constant -1.000000e+09 : f32
    %80 = vector.broadcast %cst_25 : f32 to vector<16x16xf32>
    %81 = arith.select %10, %79, %80 : vector<16x16xi1>, vector<16x16xf32>
    %cst_26 = arith.constant dense<0xFF800000> : vector<16xf32>
    %82 = vector.multi_reduction <maximumf>, %81, %cst_26 [1] : vector<16x16xf32> to vector<16xf32>
    %83 = vector.shape_cast %82 : vector<16xf32> to vector<16x1xf32>
    %84 = vector.broadcast %83 : vector<16x1xf32> to vector<16x16xf32>
    %85 = arith.subf %81, %84 : vector<16x16xf32>
    %86 = math.exp %85 : vector<16x16xf32>
    %cst_27 = arith.constant dense<0.000000e+00> : vector<16xf32>
    %87 = vector.multi_reduction <add>, %86, %cst_27 [1] : vector<16x16xf32> to vector<16xf32>
    %88 = vector.shape_cast %87 : vector<16xf32> to vector<16x1xf32>
    %89 = tpu.reciprocal %88 {approx = true} : vector<16x1xf32> -> vector<16x1xf32>
    %90 = vector.broadcast %89 : vector<16x1xf32> to vector<16x16xf32>
    %91 = arith.mulf %86, %90 : vector<16x16xf32>
    %92 = arith.truncf %91 : vector<16x16xf32> to vector<16x16xbf16>
    %cst_28 = arith.constant dense<0.000000e+00> : vector<16x8xf32>
    %93 = tpu.matmul %92, %78, %cst_28 {dimension_numbers = #tpu.dot_dimension_numbers<[1], [0], [0], [1], [0, 0, 1, 1], [], []>} : vector<16x16xbf16>, vector<16x8xbf16>, vector<16x8xf32> -> vector<16x8xf32>
    %94 = vector.extract_strided_slice %30 {offsets = [0, 24], sizes = [16, 8], strides = [1, 1]} : vector<16x128xf32> to vector<16x8xf32>
    %95 = arith.truncf %94 : vector<16x8xf32> to vector<16x8xbf16>
    %96 = vector.extract_strided_slice %30 {offsets = [0, 56], sizes = [16, 8], strides = [1, 1]} : vector<16x128xf32> to vector<16x8xf32>
    %97 = arith.truncf %96 : vector<16x8xf32> to vector<16x8xbf16>
    %98 = vector.extract_strided_slice %30 {offsets = [0, 88], sizes = [16, 8], strides = [1, 1]} : vector<16x128xf32> to vector<16x8xf32>
    %99 = arith.truncf %98 : vector<16x8xf32> to vector<16x8xbf16>
    %cst_29 = arith.constant dense<0.000000e+00> : vector<16x16xf32>
    %100 = tpu.matmul %95, %97, %cst_29 {dimension_numbers = #tpu.dot_dimension_numbers<[1], [1], [0], [0], [0, 0, 1, 0], [], []>} : vector<16x8xbf16>, vector<16x8xbf16>, vector<16x16xf32> -> vector<16x16xf32>
    %cst_30 = arith.constant -1.000000e+09 : f32
    %101 = vector.broadcast %cst_30 : f32 to vector<16x16xf32>
    %102 = arith.select %10, %100, %101 : vector<16x16xi1>, vector<16x16xf32>
    %cst_31 = arith.constant dense<0xFF800000> : vector<16xf32>
    %103 = vector.multi_reduction <maximumf>, %102, %cst_31 [1] : vector<16x16xf32> to vector<16xf32>
    %104 = vector.shape_cast %103 : vector<16xf32> to vector<16x1xf32>
    %105 = vector.broadcast %104 : vector<16x1xf32> to vector<16x16xf32>
    %106 = arith.subf %102, %105 : vector<16x16xf32>
    %107 = math.exp %106 : vector<16x16xf32>
    %cst_32 = arith.constant dense<0.000000e+00> : vector<16xf32>
    %108 = vector.multi_reduction <add>, %107, %cst_32 [1] : vector<16x16xf32> to vector<16xf32>
    %109 = vector.shape_cast %108 : vector<16xf32> to vector<16x1xf32>
    %110 = tpu.reciprocal %109 {approx = true} : vector<16x1xf32> -> vector<16x1xf32>
    %111 = vector.broadcast %110 : vector<16x1xf32> to vector<16x16xf32>
    %112 = arith.mulf %107, %111 : vector<16x16xf32>
    %113 = arith.truncf %112 : vector<16x16xf32> to vector<16x16xbf16>
    %cst_33 = arith.constant dense<0.000000e+00> : vector<16x8xf32>
    %114 = tpu.matmul %113, %99, %cst_33 {dimension_numbers = #tpu.dot_dimension_numbers<[1], [0], [0], [1], [0, 0, 1, 1], [], []>} : vector<16x16xbf16>, vector<16x8xbf16>, vector<16x8xf32> -> vector<16x8xf32>
    %115 = tpu.concatenate %51, %72, %93, %114 in 1 : vector<16x8xf32>, vector<16x8xf32>, vector<16x8xf32>, vector<16x8xf32> -> vector<16x32xf32>
    %116 = arith.truncf %115 : vector<16x32xf32> to vector<16x32xbf16>
    %cst_34 = arith.constant dense<0.000000e+00> : vector<16x32xf32>
    %117 = tpu.matmul %116, %16, %cst_34 {dimension_numbers = #tpu.dot_dimension_numbers<[1], [0], [0], [1], [0, 0, 1, 1], [], []>} : vector<16x32xbf16>, vector<32x32xbf16>, vector<16x32xf32> -> vector<16x32xf32>
    %118 = vector.broadcast %20 : vector<1x32xf32> to vector<16x32xf32>
    %119 = arith.addf %117, %118 : vector<16x32xf32>
    %120 = arith.addf %0, %119 : vector<16x32xf32>
    %cst_35 = arith.constant dense<0.000000e+00> : vector<16xf32>
    %121 = vector.multi_reduction <add>, %120, %cst_35 [1] : vector<16x32xf32> to vector<16xf32>
    %122 = vector.shape_cast %121 : vector<16xf32> to vector<16x1xf32>
    %cst_36 = arith.constant 3.200000e+01 : f32
    %123 = vector.broadcast %cst_36 : f32 to vector<16x1xf32>
    %124 = arith.divf %122, %123 : vector<16x1xf32>
    %125 = vector.broadcast %124 : vector<16x1xf32> to vector<16x32xf32>
    %126 = arith.subf %120, %125 : vector<16x32xf32>
    %127 = arith.mulf %126, %126 : vector<16x32xf32>
    %cst_37 = arith.constant dense<0.000000e+00> : vector<16xf32>
    %128 = vector.multi_reduction <add>, %127, %cst_37 [1] : vector<16x32xf32> to vector<16xf32>
    %129 = vector.shape_cast %128 : vector<16xf32> to vector<16x1xf32>
    %cst_38 = arith.constant 3.200000e+01 : f32
    %130 = vector.broadcast %cst_38 : f32 to vector<16x1xf32>
    %131 = arith.divf %129, %130 : vector<16x1xf32>
    %132 = vector.broadcast %124 : vector<16x1xf32> to vector<16x32xf32>
    %133 = arith.subf %120, %132 : vector<16x32xf32>
    %cst_39 = arith.constant 9.99999974E-6 : f32
    %134 = vector.broadcast %cst_39 : f32 to vector<16x1xf32>
    %135 = arith.addf %131, %134 : vector<16x1xf32>
    %136 = math.rsqrt %135 : vector<16x1xf32>
    %137 = vector.broadcast %136 : vector<16x1xf32> to vector<16x32xf32>
    %138 = arith.mulf %133, %137 : vector<16x32xf32>
    %139 = vector.broadcast %21 : vector<1x32xf32> to vector<16x32xf32>
    %140 = arith.mulf %138, %139 : vector<16x32xf32>
    %141 = vector.broadcast %22 : vector<1x32xf32> to vector<16x32xf32>
    %142 = arith.addf %140, %141 : vector<16x32xf32>
    %143 = arith.truncf %142 : vector<16x32xf32> to vector<16x32xbf16>
    %cst_40 = arith.constant dense<0.000000e+00> : vector<16x64xf32>
    %144 = tpu.matmul %143, %17, %cst_40 {dimension_numbers = #tpu.dot_dimension_numbers<[1], [0], [0], [1], [0, 0, 1, 1], [], []>} : vector<16x32xbf16>, vector<32x64xbf16>, vector<16x64xf32> -> vector<16x64xf32>
    %145 = vector.broadcast %23 : vector<1x64xf32> to vector<16x64xf32>
    %146 = arith.addf %144, %145 : vector<16x64xf32>
    %cst_41 = arith.constant 0.000000e+00 : f32
    %147 = vector.broadcast %cst_41 : f32 to vector<16x64xf32>
    %148 = arith.maximumf %146, %147 : vector<16x64xf32>
    %149 = arith.truncf %148 : vector<16x64xf32> to vector<16x64xbf16>
    %cst_42 = arith.constant dense<0.000000e+00> : vector<16x32xf32>
    %150 = tpu.matmul %149, %18, %cst_42 {dimension_numbers = #tpu.dot_dimension_numbers<[1], [0], [0], [1], [0, 0, 1, 1], [], []>} : vector<16x64xbf16>, vector<64x32xbf16>, vector<16x32xf32> -> vector<16x32xf32>
    %151 = vector.broadcast %24 : vector<1x32xf32> to vector<16x32xf32>
    %152 = arith.addf %150, %151 : vector<16x32xf32>
    %153 = arith.addf %142, %152 : vector<16x32xf32>
    %cst_43 = arith.constant dense<0.000000e+00> : vector<16xf32>
    %154 = vector.multi_reduction <add>, %153, %cst_43 [1] : vector<16x32xf32> to vector<16xf32>
    %155 = vector.shape_cast %154 : vector<16xf32> to vector<16x1xf32>
    %cst_44 = arith.constant 3.200000e+01 : f32
    %156 = vector.broadcast %cst_44 : f32 to vector<16x1xf32>
    %157 = arith.divf %155, %156 : vector<16x1xf32>
    %158 = vector.broadcast %157 : vector<16x1xf32> to vector<16x32xf32>
    %159 = arith.subf %153, %158 : vector<16x32xf32>
    %160 = arith.mulf %159, %159 : vector<16x32xf32>
    %cst_45 = arith.constant dense<0.000000e+00> : vector<16xf32>
    %161 = vector.multi_reduction <add>, %160, %cst_45 [1] : vector<16x32xf32> to vector<16xf32>
    %162 = vector.shape_cast %161 : vector<16xf32> to vector<16x1xf32>
    %cst_46 = arith.constant 3.200000e+01 : f32
    %163 = vector.broadcast %cst_46 : f32 to vector<16x1xf32>
    %164 = arith.divf %162, %163 : vector<16x1xf32>
    %165 = vector.broadcast %157 : vector<16x1xf32> to vector<16x32xf32>
    %166 = arith.subf %153, %165 : vector<16x32xf32>
    %cst_47 = arith.constant 9.99999974E-6 : f32
    %167 = vector.broadcast %cst_47 : f32 to vector<16x1xf32>
    %168 = arith.addf %164, %167 : vector<16x1xf32>
    %169 = math.rsqrt %168 : vector<16x1xf32>
    %170 = vector.broadcast %169 : vector<16x1xf32> to vector<16x32xf32>
    %171 = arith.mulf %166, %170 : vector<16x32xf32>
    %172 = vector.broadcast %25 : vector<1x32xf32> to vector<16x32xf32>
    %173 = arith.mulf %171, %172 : vector<16x32xf32>
    %174 = vector.broadcast %26 : vector<1x32xf32> to vector<16x32xf32>
    %175 = arith.addf %173, %174 : vector<16x32xf32>
    %c1 = arith.constant 1 : index
    %c0_48 = arith.constant 0 : index
    %c0_49 = arith.constant 0 : index
    %176 = vector.load %arg5[%c1, %c0_48, %c0_49] : memref<2x128x128xbf16, #tpu.memory_space<vmem>>, vector<1x128x128xbf16>
    %177 = vector.shape_cast %176 : vector<1x128x128xbf16> to vector<128x128xbf16>
    %c1_50 = arith.constant 1 : index
    %c0_51 = arith.constant 0 : index
    %c0_52 = arith.constant 0 : index
    %178 = vector.load %arg6[%c1_50, %c0_51, %c0_52] : memref<2x8x128xf32, #tpu.memory_space<vmem>>, vector<1x8x128xf32>
    %179 = vector.shape_cast %178 : vector<1x8x128xf32> to vector<8x128xf32>
    %180 = vector.extract_strided_slice %177 {offsets = [0, 0], sizes = [32, 128], strides = [1, 1]} : vector<128x128xbf16> to vector<32x128xbf16>
    %181 = vector.extract_strided_slice %177 {offsets = [32, 0], sizes = [32, 32], strides = [1, 1]} : vector<128x128xbf16> to vector<32x32xbf16>
    %182 = vector.extract_strided_slice %177 {offsets = [32, 32], sizes = [32, 64], strides = [1, 1]} : vector<128x128xbf16> to vector<32x64xbf16>
    %183 = vector.extract_strided_slice %177 {offsets = [64, 0], sizes = [64, 32], strides = [1, 1]} : vector<128x128xbf16> to vector<64x32xbf16>
    %184 = vector.extract_strided_slice %179 {offsets = [0, 0], sizes = [1, 128], strides = [1, 1]} : vector<8x128xf32> to vector<1x128xf32>
    %185 = vector.extract_strided_slice %179 {offsets = [1, 0], sizes = [1, 32], strides = [1, 1]} : vector<8x128xf32> to vector<1x32xf32>
    %186 = vector.extract_strided_slice %179 {offsets = [2, 0], sizes = [1, 32], strides = [1, 1]} : vector<8x128xf32> to vector<1x32xf32>
    %187 = vector.extract_strided_slice %179 {offsets = [3, 0], sizes = [1, 32], strides = [1, 1]} : vector<8x128xf32> to vector<1x32xf32>
    %188 = vector.extract_strided_slice %179 {offsets = [4, 0], sizes = [1, 64], strides = [1, 1]} : vector<8x128xf32> to vector<1x64xf32>
    %189 = vector.extract_strided_slice %179 {offsets = [5, 0], sizes = [1, 32], strides = [1, 1]} : vector<8x128xf32> to vector<1x32xf32>
    %190 = vector.extract_strided_slice %179 {offsets = [6, 0], sizes = [1, 32], strides = [1, 1]} : vector<8x128xf32> to vector<1x32xf32>
    %191 = vector.extract_strided_slice %179 {offsets = [7, 0], sizes = [1, 32], strides = [1, 1]} : vector<8x128xf32> to vector<1x32xf32>
    %192 = arith.truncf %175 : vector<16x32xf32> to vector<16x32xbf16>
    %cst_53 = arith.constant dense<0.000000e+00> : vector<16x128xf32>
    %193 = tpu.matmul %192, %180, %cst_53 {dimension_numbers = #tpu.dot_dimension_numbers<[1], [0], [0], [1], [0, 0, 1, 1], [], []>} : vector<16x32xbf16>, vector<32x128xbf16>, vector<16x128xf32> -> vector<16x128xf32>
    %194 = vector.broadcast %184 : vector<1x128xf32> to vector<16x128xf32>
    %195 = arith.addf %193, %194 : vector<16x128xf32>
    %196 = vector.extract_strided_slice %195 {offsets = [0, 0], sizes = [16, 8], strides = [1, 1]} : vector<16x128xf32> to vector<16x8xf32>
    %197 = arith.truncf %196 : vector<16x8xf32> to vector<16x8xbf16>
    %198 = vector.extract_strided_slice %195 {offsets = [0, 32], sizes = [16, 8], strides = [1, 1]} : vector<16x128xf32> to vector<16x8xf32>
    %199 = arith.truncf %198 : vector<16x8xf32> to vector<16x8xbf16>
    %200 = vector.extract_strided_slice %195 {offsets = [0, 64], sizes = [16, 8], strides = [1, 1]} : vector<16x128xf32> to vector<16x8xf32>
    %201 = arith.truncf %200 : vector<16x8xf32> to vector<16x8xbf16>
    %cst_54 = arith.constant dense<0.000000e+00> : vector<16x16xf32>
    %202 = tpu.matmul %197, %199, %cst_54 {dimension_numbers = #tpu.dot_dimension_numbers<[1], [1], [0], [0], [0, 0, 1, 0], [], []>} : vector<16x8xbf16>, vector<16x8xbf16>, vector<16x16xf32> -> vector<16x16xf32>
    %cst_55 = arith.constant -1.000000e+09 : f32
    %203 = vector.broadcast %cst_55 : f32 to vector<16x16xf32>
    %204 = arith.select %10, %202, %203 : vector<16x16xi1>, vector<16x16xf32>
    %cst_56 = arith.constant dense<0xFF800000> : vector<16xf32>
    %205 = vector.multi_reduction <maximumf>, %204, %cst_56 [1] : vector<16x16xf32> to vector<16xf32>
    %206 = vector.shape_cast %205 : vector<16xf32> to vector<16x1xf32>
    %207 = vector.broadcast %206 : vector<16x1xf32> to vector<16x16xf32>
    %208 = arith.subf %204, %207 : vector<16x16xf32>
    %209 = math.exp %208 : vector<16x16xf32>
    %cst_57 = arith.constant dense<0.000000e+00> : vector<16xf32>
    %210 = vector.multi_reduction <add>, %209, %cst_57 [1] : vector<16x16xf32> to vector<16xf32>
    %211 = vector.shape_cast %210 : vector<16xf32> to vector<16x1xf32>
    %212 = tpu.reciprocal %211 {approx = true} : vector<16x1xf32> -> vector<16x1xf32>
    %213 = vector.broadcast %212 : vector<16x1xf32> to vector<16x16xf32>
    %214 = arith.mulf %209, %213 : vector<16x16xf32>
    %215 = arith.truncf %214 : vector<16x16xf32> to vector<16x16xbf16>
    %cst_58 = arith.constant dense<0.000000e+00> : vector<16x8xf32>
    %216 = tpu.matmul %215, %201, %cst_58 {dimension_numbers = #tpu.dot_dimension_numbers<[1], [0], [0], [1], [0, 0, 1, 1], [], []>} : vector<16x16xbf16>, vector<16x8xbf16>, vector<16x8xf32> -> vector<16x8xf32>
    %217 = vector.extract_strided_slice %195 {offsets = [0, 8], sizes = [16, 8], strides = [1, 1]} : vector<16x128xf32> to vector<16x8xf32>
    %218 = arith.truncf %217 : vector<16x8xf32> to vector<16x8xbf16>
    %219 = vector.extract_strided_slice %195 {offsets = [0, 40], sizes = [16, 8], strides = [1, 1]} : vector<16x128xf32> to vector<16x8xf32>
    %220 = arith.truncf %219 : vector<16x8xf32> to vector<16x8xbf16>
    %221 = vector.extract_strided_slice %195 {offsets = [0, 72], sizes = [16, 8], strides = [1, 1]} : vector<16x128xf32> to vector<16x8xf32>
    %222 = arith.truncf %221 : vector<16x8xf32> to vector<16x8xbf16>
    %cst_59 = arith.constant dense<0.000000e+00> : vector<16x16xf32>
    %223 = tpu.matmul %218, %220, %cst_59 {dimension_numbers = #tpu.dot_dimension_numbers<[1], [1], [0], [0], [0, 0, 1, 0], [], []>} : vector<16x8xbf16>, vector<16x8xbf16>, vector<16x16xf32> -> vector<16x16xf32>
    %cst_60 = arith.constant -1.000000e+09 : f32
    %224 = vector.broadcast %cst_60 : f32 to vector<16x16xf32>
    %225 = arith.select %10, %223, %224 : vector<16x16xi1>, vector<16x16xf32>
    %cst_61 = arith.constant dense<0xFF800000> : vector<16xf32>
    %226 = vector.multi_reduction <maximumf>, %225, %cst_61 [1] : vector<16x16xf32> to vector<16xf32>
    %227 = vector.shape_cast %226 : vector<16xf32> to vector<16x1xf32>
    %228 = vector.broadcast %227 : vector<16x1xf32> to vector<16x16xf32>
    %229 = arith.subf %225, %228 : vector<16x16xf32>
    %230 = math.exp %229 : vector<16x16xf32>
    %cst_62 = arith.constant dense<0.000000e+00> : vector<16xf32>
    %231 = vector.multi_reduction <add>, %230, %cst_62 [1] : vector<16x16xf32> to vector<16xf32>
    %232 = vector.shape_cast %231 : vector<16xf32> to vector<16x1xf32>
    %233 = tpu.reciprocal %232 {approx = true} : vector<16x1xf32> -> vector<16x1xf32>
    %234 = vector.broadcast %233 : vector<16x1xf32> to vector<16x16xf32>
    %235 = arith.mulf %230, %234 : vector<16x16xf32>
    %236 = arith.truncf %235 : vector<16x16xf32> to vector<16x16xbf16>
    %cst_63 = arith.constant dense<0.000000e+00> : vector<16x8xf32>
    %237 = tpu.matmul %236, %222, %cst_63 {dimension_numbers = #tpu.dot_dimension_numbers<[1], [0], [0], [1], [0, 0, 1, 1], [], []>} : vector<16x16xbf16>, vector<16x8xbf16>, vector<16x8xf32> -> vector<16x8xf32>
    %238 = vector.extract_strided_slice %195 {offsets = [0, 16], sizes = [16, 8], strides = [1, 1]} : vector<16x128xf32> to vector<16x8xf32>
    %239 = arith.truncf %238 : vector<16x8xf32> to vector<16x8xbf16>
    %240 = vector.extract_strided_slice %195 {offsets = [0, 48], sizes = [16, 8], strides = [1, 1]} : vector<16x128xf32> to vector<16x8xf32>
    %241 = arith.truncf %240 : vector<16x8xf32> to vector<16x8xbf16>
    %242 = vector.extract_strided_slice %195 {offsets = [0, 80], sizes = [16, 8], strides = [1, 1]} : vector<16x128xf32> to vector<16x8xf32>
    %243 = arith.truncf %242 : vector<16x8xf32> to vector<16x8xbf16>
    %cst_64 = arith.constant dense<0.000000e+00> : vector<16x16xf32>
    %244 = tpu.matmul %239, %241, %cst_64 {dimension_numbers = #tpu.dot_dimension_numbers<[1], [1], [0], [0], [0, 0, 1, 0], [], []>} : vector<16x8xbf16>, vector<16x8xbf16>, vector<16x16xf32> -> vector<16x16xf32>
    %cst_65 = arith.constant -1.000000e+09 : f32
    %245 = vector.broadcast %cst_65 : f32 to vector<16x16xf32>
    %246 = arith.select %10, %244, %245 : vector<16x16xi1>, vector<16x16xf32>
    %cst_66 = arith.constant dense<0xFF800000> : vector<16xf32>
    %247 = vector.multi_reduction <maximumf>, %246, %cst_66 [1] : vector<16x16xf32> to vector<16xf32>
    %248 = vector.shape_cast %247 : vector<16xf32> to vector<16x1xf32>
    %249 = vector.broadcast %248 : vector<16x1xf32> to vector<16x16xf32>
    %250 = arith.subf %246, %249 : vector<16x16xf32>
    %251 = math.exp %250 : vector<16x16xf32>
    %cst_67 = arith.constant dense<0.000000e+00> : vector<16xf32>
    %252 = vector.multi_reduction <add>, %251, %cst_67 [1] : vector<16x16xf32> to vector<16xf32>
    %253 = vector.shape_cast %252 : vector<16xf32> to vector<16x1xf32>
    %254 = tpu.reciprocal %253 {approx = true} : vector<16x1xf32> -> vector<16x1xf32>
    %255 = vector.broadcast %254 : vector<16x1xf32> to vector<16x16xf32>
    %256 = arith.mulf %251, %255 : vector<16x16xf32>
    %257 = arith.truncf %256 : vector<16x16xf32> to vector<16x16xbf16>
    %cst_68 = arith.constant dense<0.000000e+00> : vector<16x8xf32>
    %258 = tpu.matmul %257, %243, %cst_68 {dimension_numbers = #tpu.dot_dimension_numbers<[1], [0], [0], [1], [0, 0, 1, 1], [], []>} : vector<16x16xbf16>, vector<16x8xbf16>, vector<16x8xf32> -> vector<16x8xf32>
    %259 = vector.extract_strided_slice %195 {offsets = [0, 24], sizes = [16, 8], strides = [1, 1]} : vector<16x128xf32> to vector<16x8xf32>
    %260 = arith.truncf %259 : vector<16x8xf32> to vector<16x8xbf16>
    %261 = vector.extract_strided_slice %195 {offsets = [0, 56], sizes = [16, 8], strides = [1, 1]} : vector<16x128xf32> to vector<16x8xf32>
    %262 = arith.truncf %261 : vector<16x8xf32> to vector<16x8xbf16>
    %263 = vector.extract_strided_slice %195 {offsets = [0, 88], sizes = [16, 8], strides = [1, 1]} : vector<16x128xf32> to vector<16x8xf32>
    %264 = arith.truncf %263 : vector<16x8xf32> to vector<16x8xbf16>
    %cst_69 = arith.constant dense<0.000000e+00> : vector<16x16xf32>
    %265 = tpu.matmul %260, %262, %cst_69 {dimension_numbers = #tpu.dot_dimension_numbers<[1], [1], [0], [0], [0, 0, 1, 0], [], []>} : vector<16x8xbf16>, vector<16x8xbf16>, vector<16x16xf32> -> vector<16x16xf32>
    %cst_70 = arith.constant -1.000000e+09 : f32
    %266 = vector.broadcast %cst_70 : f32 to vector<16x16xf32>
    %267 = arith.select %10, %265, %266 : vector<16x16xi1>, vector<16x16xf32>
    %cst_71 = arith.constant dense<0xFF800000> : vector<16xf32>
    %268 = vector.multi_reduction <maximumf>, %267, %cst_71 [1] : vector<16x16xf32> to vector<16xf32>
    %269 = vector.shape_cast %268 : vector<16xf32> to vector<16x1xf32>
    %270 = vector.broadcast %269 : vector<16x1xf32> to vector<16x16xf32>
    %271 = arith.subf %267, %270 : vector<16x16xf32>
    %272 = math.exp %271 : vector<16x16xf32>
    %cst_72 = arith.constant dense<0.000000e+00> : vector<16xf32>
    %273 = vector.multi_reduction <add>, %272, %cst_72 [1] : vector<16x16xf32> to vector<16xf32>
    %274 = vector.shape_cast %273 : vector<16xf32> to vector<16x1xf32>
    %275 = tpu.reciprocal %274 {approx = true} : vector<16x1xf32> -> vector<16x1xf32>
    %276 = vector.broadcast %275 : vector<16x1xf32> to vector<16x16xf32>
    %277 = arith.mulf %272, %276 : vector<16x16xf32>
    %278 = arith.truncf %277 : vector<16x16xf32> to vector<16x16xbf16>
    %cst_73 = arith.constant dense<0.000000e+00> : vector<16x8xf32>
    %279 = tpu.matmul %278, %264, %cst_73 {dimension_numbers = #tpu.dot_dimension_numbers<[1], [0], [0], [1], [0, 0, 1, 1], [], []>} : vector<16x16xbf16>, vector<16x8xbf16>, vector<16x8xf32> -> vector<16x8xf32>
    %280 = tpu.concatenate %216, %237, %258, %279 in 1 : vector<16x8xf32>, vector<16x8xf32>, vector<16x8xf32>, vector<16x8xf32> -> vector<16x32xf32>
    %281 = arith.truncf %280 : vector<16x32xf32> to vector<16x32xbf16>
    %cst_74 = arith.constant dense<0.000000e+00> : vector<16x32xf32>
    %282 = tpu.matmul %281, %181, %cst_74 {dimension_numbers = #tpu.dot_dimension_numbers<[1], [0], [0], [1], [0, 0, 1, 1], [], []>} : vector<16x32xbf16>, vector<32x32xbf16>, vector<16x32xf32> -> vector<16x32xf32>
    %283 = vector.broadcast %185 : vector<1x32xf32> to vector<16x32xf32>
    %284 = arith.addf %282, %283 : vector<16x32xf32>
    %285 = arith.addf %175, %284 : vector<16x32xf32>
    %cst_75 = arith.constant dense<0.000000e+00> : vector<16xf32>
    %286 = vector.multi_reduction <add>, %285, %cst_75 [1] : vector<16x32xf32> to vector<16xf32>
    %287 = vector.shape_cast %286 : vector<16xf32> to vector<16x1xf32>
    %cst_76 = arith.constant 3.200000e+01 : f32
    %288 = vector.broadcast %cst_76 : f32 to vector<16x1xf32>
    %289 = arith.divf %287, %288 : vector<16x1xf32>
    %290 = vector.broadcast %289 : vector<16x1xf32> to vector<16x32xf32>
    %291 = arith.subf %285, %290 : vector<16x32xf32>
    %292 = arith.mulf %291, %291 : vector<16x32xf32>
    %cst_77 = arith.constant dense<0.000000e+00> : vector<16xf32>
    %293 = vector.multi_reduction <add>, %292, %cst_77 [1] : vector<16x32xf32> to vector<16xf32>
    %294 = vector.shape_cast %293 : vector<16xf32> to vector<16x1xf32>
    %cst_78 = arith.constant 3.200000e+01 : f32
    %295 = vector.broadcast %cst_78 : f32 to vector<16x1xf32>
    %296 = arith.divf %294, %295 : vector<16x1xf32>
    %297 = vector.broadcast %289 : vector<16x1xf32> to vector<16x32xf32>
    %298 = arith.subf %285, %297 : vector<16x32xf32>
    %cst_79 = arith.constant 9.99999974E-6 : f32
    %299 = vector.broadcast %cst_79 : f32 to vector<16x1xf32>
    %300 = arith.addf %296, %299 : vector<16x1xf32>
    %301 = math.rsqrt %300 : vector<16x1xf32>
    %302 = vector.broadcast %301 : vector<16x1xf32> to vector<16x32xf32>
    %303 = arith.mulf %298, %302 : vector<16x32xf32>
    %304 = vector.broadcast %186 : vector<1x32xf32> to vector<16x32xf32>
    %305 = arith.mulf %303, %304 : vector<16x32xf32>
    %306 = vector.broadcast %187 : vector<1x32xf32> to vector<16x32xf32>
    %307 = arith.addf %305, %306 : vector<16x32xf32>
    %308 = arith.truncf %307 : vector<16x32xf32> to vector<16x32xbf16>
    %cst_80 = arith.constant dense<0.000000e+00> : vector<16x64xf32>
    %309 = tpu.matmul %308, %182, %cst_80 {dimension_numbers = #tpu.dot_dimension_numbers<[1], [0], [0], [1], [0, 0, 1, 1], [], []>} : vector<16x32xbf16>, vector<32x64xbf16>, vector<16x64xf32> -> vector<16x64xf32>
    %310 = vector.broadcast %188 : vector<1x64xf32> to vector<16x64xf32>
    %311 = arith.addf %309, %310 : vector<16x64xf32>
    %cst_81 = arith.constant 0.000000e+00 : f32
    %312 = vector.broadcast %cst_81 : f32 to vector<16x64xf32>
    %313 = arith.maximumf %311, %312 : vector<16x64xf32>
    %314 = arith.truncf %313 : vector<16x64xf32> to vector<16x64xbf16>
    %cst_82 = arith.constant dense<0.000000e+00> : vector<16x32xf32>
    %315 = tpu.matmul %314, %183, %cst_82 {dimension_numbers = #tpu.dot_dimension_numbers<[1], [0], [0], [1], [0, 0, 1, 1], [], []>} : vector<16x64xbf16>, vector<64x32xbf16>, vector<16x32xf32> -> vector<16x32xf32>
    %316 = vector.broadcast %189 : vector<1x32xf32> to vector<16x32xf32>
    %317 = arith.addf %315, %316 : vector<16x32xf32>
    %318 = arith.addf %307, %317 : vector<16x32xf32>
    %cst_83 = arith.constant dense<0.000000e+00> : vector<16xf32>
    %319 = vector.multi_reduction <add>, %318, %cst_83 [1] : vector<16x32xf32> to vector<16xf32>
    %320 = vector.shape_cast %319 : vector<16xf32> to vector<16x1xf32>
    %cst_84 = arith.constant 3.200000e+01 : f32
    %321 = vector.broadcast %cst_84 : f32 to vector<16x1xf32>
    %322 = arith.divf %320, %321 : vector<16x1xf32>
    %323 = vector.broadcast %322 : vector<16x1xf32> to vector<16x32xf32>
    %324 = arith.subf %318, %323 : vector<16x32xf32>
    %325 = arith.mulf %324, %324 : vector<16x32xf32>
    %cst_85 = arith.constant dense<0.000000e+00> : vector<16xf32>
    %326 = vector.multi_reduction <add>, %325, %cst_85 [1] : vector<16x32xf32> to vector<16xf32>
    %327 = vector.shape_cast %326 : vector<16xf32> to vector<16x1xf32>
    %cst_86 = arith.constant 3.200000e+01 : f32
    %328 = vector.broadcast %cst_86 : f32 to vector<16x1xf32>
    %329 = arith.divf %327, %328 : vector<16x1xf32>
    %330 = vector.broadcast %322 : vector<16x1xf32> to vector<16x32xf32>
    %331 = arith.subf %318, %330 : vector<16x32xf32>
    %cst_87 = arith.constant 9.99999974E-6 : f32
    %332 = vector.broadcast %cst_87 : f32 to vector<16x1xf32>
    %333 = arith.addf %329, %332 : vector<16x1xf32>
    %334 = math.rsqrt %333 : vector<16x1xf32>
    %335 = vector.broadcast %334 : vector<16x1xf32> to vector<16x32xf32>
    %336 = arith.mulf %331, %335 : vector<16x32xf32>
    %337 = vector.broadcast %190 : vector<1x32xf32> to vector<16x32xf32>
    %338 = arith.mulf %336, %337 : vector<16x32xf32>
    %339 = vector.broadcast %191 : vector<1x32xf32> to vector<16x32xf32>
    %340 = arith.addf %338, %339 : vector<16x32xf32>
    %341 = tpu.iota {dimensions = array<i32: 0>} : vector<2x16xi32>
    %c0_88 = arith.constant 0 : index
    %c0_89 = arith.constant 0 : index
    %342 = vector.load %arg3[%c0_88, %c0_89] : memref<1x16xi32, #tpu.memory_space<vmem>>, vector<1x16xi32>
    %343 = vector.broadcast %342 : vector<1x16xi32> to vector<2x16xi32>
    %344 = arith.cmpi eq, %341, %343 : vector<2x16xi32>
    %cst_90 = arith.constant 1.250000e-01 : f32
    %cst_91 = arith.constant 0.000000e+00 : f32
    %345 = vector.broadcast %cst_90 : f32 to vector<2x16xf32>
    %346 = vector.broadcast %cst_91 : f32 to vector<2x16xf32>
    %347 = arith.select %344, %345, %346 : vector<2x16xi1>, vector<2x16xf32>
    %cst_92 = arith.constant dense<0.000000e+00> : vector<2x32xf32>
    %348 = tpu.matmul %347, %340, %cst_92 {dimension_numbers = #tpu.dot_dimension_numbers<[1], [0], [0], [1], [0, 0, 1, 1], [], []>} : vector<2x16xf32>, vector<16x32xf32>, vector<2x32xf32> -> vector<2x32xf32>
    %c0_93 = arith.constant 0 : index
    %c0_94 = arith.constant 0 : index
    %349 = vector.load %arg7[%c0_93, %c0_94] : memref<2x32xf32, #tpu.memory_space<vmem>>, vector<2x32xf32>
    tpu.vector_store %arg7[%c0_93, %c0_94], %348 {strides = array<i32>} : memref<2x32xf32, #tpu.memory_space<vmem>>, vector<2x32xf32>,
    return
  }
  func.func @transform_0(%arg0: i32) -> (i32, i32) {
    %c0_i32 = arith.constant 0 : i32
    %c0_i32_0 = arith.constant 0 : i32
    %c0_i32_1 = arith.constant 0 : i32
    return %c0_i32, %c0_i32_0 : i32, i32
  }
  func.func @transform_1(%arg0: i32) -> (i32, i32) {
    %c0_i32 = arith.constant 0 : i32
    %c0_i32_0 = arith.constant 0 : i32
    %c0_i32_1 = arith.constant 0 : i32
    return %c0_i32, %c0_i32_0 : i32, i32
  }
  func.func @transform_2(%arg0: i32) -> (i32, i32) {
    %c0_i32 = arith.constant 0 : i32
    %c0_i32_0 = arith.constant 0 : i32
    %c0_i32_1 = arith.constant 0 : i32
    return %c0_i32, %c0_i32_0 : i32, i32
  }
  func.func @transform_3(%arg0: i32) -> (i32, i32) {
    %c0_i32 = arith.constant 0 : i32
    %c0_i32_0 = arith.constant 0 : i32
    %c0_i32_1 = arith.constant 0 : i32
    return %c0_i32, %c0_i32_0 : i32, i32
  }
  func.func @transform_4(%arg0: i32) -> (i32, i32, i32) {
    %c0_i32 = arith.constant 0 : i32
    %c0_i32_0 = arith.constant 0 : i32
    %c0_i32_1 = arith.constant 0 : i32
    %c0_i32_2 = arith.constant 0 : i32
    return %c0_i32, %c0_i32_0, %c0_i32_1 : i32, i32, i32
  }
  func.func @transform_5(%arg0: i32) -> (i32, i32, i32) {
    %c0_i32 = arith.constant 0 : i32
    %c0_i32_0 = arith.constant 0 : i32
    %c0_i32_1 = arith.constant 0 : i32
    %c0_i32_2 = arith.constant 0 : i32
    return %c0_i32, %c0_i32_0, %c0_i32_1 : i32, i32, i32
  }
  func.func @transform_6(%arg0: i32) -> (i32, i32) {
    %c0_i32 = arith.constant 0 : i32
    %c0_i32_0 = arith.constant 0 : i32
    %c0_i32_1 = arith.constant 0 : i32
    return %c0_i32, %c0_i32_0 : i32, i32
  }
}

</mosaic_0001>

<bundles_post_ra>
// kernel: tpu_custom_call.1
= control target key start
LH: loop header
LB: loop body
LE: loop exit
PB: predicated region body
PF: predicated region fallthrough
CT: control target
= control target key end

     0   :  { %11 = vsyncpa [#allocation3], 0  ;;  %s2958_s0 = inlined_call_operand.vmem [shape: f32[16,32], index: 0, kind: input, shape index: {}]   ;;  %s2959_s1 = inlined_call_operand.vmem [shape: s32[16,1], index: 1, kind: input, shape index: {}]   ;;  %s2960_s2 = inlined_call_operand.hbm [shape: s32[1,16], index: 2, kind: input, shape index: {}]   ;;  %s2961_s3 = inlined_call_operand.hbm [shape: f32[1,16], index: 3, kind: input, shape index: {}]   ;;  %s2962_s4 = inlined_call_operand.hbm [shape: bf16[2,128,128], index: 4, kind: input, shape index: {}]   ;;  %s2963_s5 = inlined_call_operand.vmem [shape: f32[2,8,128], index: 5, kind: input, shape index: {}]   ;;  %s2964_s6 = inlined_call_operand.hbm [shape: f32[2,32], index: 6, kind: output, shape index: {}]  }
   0x1   :  { %12 = vsyncpa [#allocation6], 0 }
   0x2   :  { %13 = vsyncpa [#allocation4], 0  ;;  %s2464_s21 = smov [#allocation5]   ;;  %s2465_s23 = smov [#allocation2]  }
   0x3   :  { %s34_s22 = sshll.u32 %s2464_s21, 4  ;;  %s24_s24 = sshll.u32 %s2465_s23, 4  ;;  %s35_s22 = int_to_ptr.vmem [resolvable:$true] %s34_s22  ;;  %s25_s24 = int_to_ptr.vmem [resolvable:$true] %s24_s24 }
   0x4   :  { %s2370_s27 = scalar_lea.hbm %s2961_s3, 16 }
   0x5   :  { %p2371_p0 = scmp.ne.s32.totalorder %s2961_s3, %s2370_s27  ;;  %p2374_p1 = scmp.lt.u32.totalorder %s2370_s27, %s2961_s3 }
   0x7   :  { %p2376_p2 = pnand %p2374_p1, %p2371_p0 }
   0x9   :  { %2379 = shalt.err (!%p2376_p2)
}
   0xa   :  { %s2380_s8 = scalar_lea.vmem %s35_s22, 16  ;;  %s2384_s9 = scalar_lea.vmem %s35_s22, 32 }
   0xb   :  { %p2381_p3 = scmp.ne.s32.totalorder %s35_s22, %s2380_s8  ;;  %p2385_p4 = scmp.lt.s32.totalorder %s35_s22, %s35_s22 }
   0xc   :  { %p2386_p5 = scmp.lt.s32.totalorder %s2384_s9, %s2380_s8 }
   0xe   :  { %p2387_p6 = por %p2386_p5, %p2385_p4 }
  0x10   :  { %p2388_p7 = pnand %p2387_p6, %p2381_p3 }
  0x12   :  { %2391 = shalt.err (!%p2388_p7)
}
  0x13   :  { %37 = dma.hbm_to_vmem [thread:$0]  %s2961_s3, 16, %s35_s22, [#allocation6]  }
  0x14   :  { %s2392_s14 = scalar_lea.hbm %s2960_s2, 16 }
  0x15   :  { %p2393_p8 = scmp.ne.s32.totalorder %s2960_s2, %s2392_s14  ;;  %p2396_p9 = scmp.lt.u32.totalorder %s2392_s14, %s2960_s2 }
  0x17   :  { %p2398_p10 = pnand %p2396_p9, %p2393_p8 }
  0x19   :  { %2401 = shalt.err (!%p2398_p10)
}
  0x1a   :  { %s2402_s19 = scalar_lea.vmem %s25_s24, 16  ;;  %s2406_s20 = scalar_lea.vmem %s25_s24, 32 }
  0x1b   :  { %p2403_p11 = scmp.ne.s32.totalorder %s25_s24, %s2402_s19  ;;  %p2407_p12 = scmp.lt.s32.totalorder %s25_s24, %s25_s24 }
  0x1c   :  { %p2408_p13 = scmp.lt.s32.totalorder %s2406_s20, %s2402_s19 }
  0x1e   :  { %p2409_p0 = por %p2408_p13, %p2407_p12 }
  0x20   :  { %p2410_p1 = pnand %p2409_p0, %p2403_p11 }
  0x22   :  { %2413 = shalt.err (!%p2410_p1)
}
  0x23   :  { %27 = dma.hbm_to_vmem [thread:$0]  %s2960_s2, 16, %s25_s24, [#allocation3]  }
  0x24   :  { %s2466_s22 = smov [#allocation7]   ;;  %s2414_s27 = scalar_lea.hbm %s2962_s4, 2048 }
  0x25   :  { %s43_s23 = sshll.u32 %s2466_s22, 4  ;;  %p2415_p2 = scmp.ne.s32.totalorder %s2962_s4, %s2414_s27  ;;  %s44_s23 = int_to_ptr.vmem [resolvable:$true] %s43_s23 }
  0x26   :  { %p2418_p3 = scmp.lt.u32.totalorder %s2414_s27, %s2962_s4 }
  0x28   :  { %p2420_p4 = pnand %p2418_p3, %p2415_p2 }
  0x2a   :  { %2423 = shalt.err (!%p2420_p4)
}
  0x2b   :  { %s2424_s8 = scalar_lea.vmem %s44_s23, 2048  ;;  %p2429_p6 = scmp.lt.s32.totalorder %s44_s23, %s44_s23 }
  0x2c   :  { %p2425_p5 = scmp.ne.s32.totalorder %s44_s23, %s2424_s8  ;;  %p2430_p7 = scmp.lt.s32.totalorder %s2424_s8, %s2424_s8 }
  0x2e   :  { %p2431_p8 = por %p2430_p7, %p2429_p6 }
  0x30   :  { %p2432_p9 = pnand %p2431_p8, %p2425_p5 }
  0x32   :  { %2435 = shalt.err (!%p2432_p9)
}
  0x33   :  { %s2467_s2 = smov 64   ;;  %s2468_s24 = smov 4  }
  0x34   :  { %49 = dma.hbm_to_vmem [thread:$0]  %s2962_s4, 2048, %s44_s23, [#allocation6], %s2467_s2, %s2467_s2, %s2468_s24  }
  0x35   :  { %2458 = dma.done.wait [#allocation3], 16  }
  0x36   :  { %2459 = vsyncadd [#allocation3], 4294967280 }
  0x37   :  { %2460 = dma.done.wait [#allocation6], 2064  }
  0x38   :  { %2461 = vsyncadd [#allocation6], 4294965232  ;;  %v2469_v0 = vmov 0.0   ;;  %vm2470_vm0 = vmmov 0   ;;  %v2273_v1 = vld [vmem:[#allocation7] sm:$0xff]   ;;  %v2274_v2 = vld [vmem:[#allocation7 + $0x8] sm:$0xff]   ;;  %v82_v6 = vlaneseq }
  0x39   :  { %2040 = vmatprep.subr.bf16.mxu1 %v2469_v0  ;;  %2044 = vmatprep.mubr.msk.bf16.mxu1 %vm2470_vm0, %v2469_v0  ;;  %v2569_v3 = vld [vmem:[%s2958_s0] sm:$0xff]  ;;  %v2574_v4 = vld [vmem:[%s2958_s0 + $0x8] sm:$0xff]  ;;  %vm123_vm1 = vcmask 261120   ;;  %s2471_s15 = smov 120   ;;  %s2472_s16 = smov 96   ;;  %v2478_v20 = vmov 0  }
  0x3a   :  { %2054 = vmatprep.subr.bf16.mxu0 %v2469_v0  ;;  %2056 = vmatprep.mubr.msk.bf16.mxu0 %vm2470_vm0, %v2469_v0  ;;  %v106_v5 = vpack.c.bf16 %v2574_v4, %v2569_v3  ;;  %v2583_v7 = vshrl.u32 %v82_v6, 7  ;;  %v2591_v9 = vld [vmem:[%s2963_s5] sm:$0xff]  ;;  %s2473_s17 = smov 80   ;;  %s2474_s18 = smov 88   ;;  %v65_v19 = vld [vmem:[%s2959_s1 + $0x8] sm:$0xff]  ;;  %vm172_vm2 = vcmask 64512  }
  0x3b   :  { %2041 = vmatpush3.bf16.msra.mxu1 %v2273_v1  ;;  %s2475_s19 = smov 72   ;;  %s2476_s20 = smov 112   ;;  %v64_v18 = vld [vmem:[%s2959_s1] sm:$0xff]  ;;  %2241 = vset.pattern.permute.xlu1 %v2478_v20  ;;  %vm222_vm8 = vcmask 130048   ;;  %vm690_vm10 = vcmask 195584   ;;  %vm881_vm11 = vcmask 523264  }
  0x3c   :  { %2042 = vmatprep.subr.bf16.mxu1 %v2469_v0  ;;  %v2586_v8 = vsub.s32 0, %v2583_v7  ;;  %s2477_s3 = smov 104   ;;  %2242 = vset.pattern.permute.xlu0 %v2478_v20  ;;  %v79_v32 = vld [vmem:[#allocation5] sm:$0x1]  ;;  %v1934_v35 = vld [vmem:[#allocation2] ss:$0 sm:$0xff] }
  0x3d   :  { %vm80_vm3 = vcmp.lt.f32.partialorder %v79_v32, 0.5  ;;  %s2479_s1 = smov 48   ;;  %s2480_s26 = smov 40   ;;  %vm1916_vm13 = vcmask 254976  }
  0x3e   :  { %v110_v10 = vrot.slane %v2591_v9, %v2586_v8  ;;  %v81_v33 = vsel %vm80_vm3, 1, %v2478_v20  ;;  %s2481_s27 = smov 56   ;;  %s2482_s28 = smov 8  }
  0x3f   :  { %2043 = vmatpush3.bf16.msra.mxu1 %v2274_v2  ;;  %v85_v34 = vrot.slane %v81_v33, %v2586_v8  ;;  %s2483_s29 = smov 16   ;;  %s2484_s30 = smov 24  }
  0x40   :  { %2048 = vmatprep.subr.bf16.mxu1 %v2469_v0 }
  0x41   :  { %vm86_vm4 = vcmp.eq.s32.totalorder %v85_v34, 1 }
  0x42   :  { %2045 = vmatmul.mubr.msk.bf16.vlgmr.msra.gmra.mrb[0].mxu1 %vm123_vm1, %v106_v5 }
  0x43   :  { %2050 = vmatprep.mubr.msk.bf16.mxu1 %vm2470_vm0, %v2469_v0 }
 0x115   :  { %v161_v11 = vpop.f32.mrb[0].mxu1 }
 0x116   :  { %v2046_v12 = vpop.f32.mrb[1].mxu1  ;;  %v162_v14 = vadd.f32 %v161_v11, %v110_v10 }
 0x117   :  { %v164_v13 = vpop.f32.mrb[2].mxu1 }
 0x118   :  { %v165_v15 = vadd.f32 %v164_v13, %v110_v10  ;;  %v2047_v16 = vpop.f32.mrb[3].mxu1 }
 0x11a   :  { %v2595_v17 = vpack.c.bf16 %v165_v15, %v162_v14 }
 0x11c   :  { %293 = vrot.lane.b32.xlu1 %v2595_v17, %s2471_s15  ;;  %170 = vrot.lane.b32.xlu0 %v2595_v17, %s2472_s16 }
 0x120   :  { %418 = vrot.lane.b32.xlu1 %v2595_v17, %s2473_s17  ;;  %295 = vrot.lane.b32.xlu0 %v2595_v17, %s2474_s18 }
 0x124   :  { %541 = vrot.lane.b32.xlu1 %v2595_v17, %s2475_s19  ;;  %416 = vrot.lane.b32.xlu0 %v2595_v17, %s2476_s20 }
 0x128   :  { %539 = vrot.lane.b32.xlu0 %v2595_v17, %s2477_s3  ;;  %68 = vperm.xlu1 %2241, %v64_v18  }
 0x12c   :  { %71 = vperm.xlu0 %2242, %v65_v19  }
 0x18e   :  { %v171_v21 = vpop.permute.xlu0 %170  ;;  %v294_v24 = vpop.permute.xlu1 %293 }
 0x18f   :  { %v177_v22 = vsel %vm172_vm2, %v171_v21, 0 }
 0x190   :  { %2049 = vmatpush3.bf16.xpose.msra.mxu1 %v177_v22 }
 0x191   :  { %2060 = vmatprep.subr.bf16.mxu1 %v2469_v0 }
 0x192   :  { %v296_v23 = vpop.permute.xlu0 %295  ;;  %v419_v26 = vpop.permute.xlu1 %418 }
 0x193   :  { %v301_v25 = vsel %vm172_vm2, %v296_v23, 0  ;;  %v424_v27 = vsel %vm172_vm2, %v419_v26, 0 }
 0x196   :  { %v542_v28 = vpop.permute.xlu1 %541  ;;  %v417_v29 = vpop.permute.xlu0 %416 }
 0x197   :  { %2051 = vmatmul.mubr.msk.bf16.vlgmr.msra.gmra.mrb[4].mxu1 %vm172_vm2, %v2595_v17  ;;  %v547_v30 = vsel %vm172_vm2, %v542_v28, 0 }
 0x198   :  { %2061 = vmatpush3.bf16.xpose.msra.mxu1 %v301_v25  ;;  %2062 = vmatprep.mubr.msk.bf16.mxu1 %vm2470_vm0, %v2469_v0 }
 0x199   :  { %2072 = vmatprep.subr.bf16.mxu1 %v2469_v0 }
 0x19a   :  { %v540_v31 = vpop.permute.xlu0 %539 }
 0x19f   :  { %2063 = vmatmul.mubr.msk.bf16.vlgmr.msra.gmra.mrb[8].mxu1 %vm172_vm2, %v294_v24 }
 0x1a0   :  { %2073 = vmatpush3.bf16.xpose.msra.mxu1 %v424_v27  ;;  %2074 = vmatprep.mubr.msk.bf16.mxu1 %vm2470_vm0, %v2469_v0 }
 0x1a1   :  { %2084 = vmatprep.subr.bf16.mxu1 %v2469_v0 }
 0x1a7   :  { %2075 = vmatmul.mubr.msk.bf16.vlgmr.msra.gmra.mrb[12].mxu1 %vm172_vm2, %v417_v29  ;;  %v69_v36 = vpop.permute.xlu1 %68 }
 0x1a8   :  { %2085 = vmatpush3.bf16.xpose.msra.mxu1 %v547_v30  ;;  %2086 = vmatprep.mubr.msk.bf16.mxu1 %vm2470_vm0, %v2469_v0  ;;  %vm77_vm5 = vcmp.eq.s32.totalorder %v69_v36, %v1934_v35 }
 0x1a9   :  { %2096 = vmatprep.subr.bf16.mxu1 %v2469_v0  ;;  %vm2639_vm7 = vmand %vm77_vm5, %vm86_vm4 }
 0x1ab   :  { %v72_v37 = vpop.permute.xlu0 %71 }
 0x1ac   :  { %vm78_vm6 = vcmp.eq.s32.totalorder %v72_v37, %v1934_v35 }
 0x1ad   :  { %vm2643_vm9 = vmand %vm78_vm6, %vm86_vm4 }
 0x1af   :  { %2087 = vmatmul.mubr.msk.bf16.vlgmr.msra.gmra.mrb[16].mxu1 %vm172_vm2, %v540_v31 }
 0x1b0   :  { %2100 = vmatprep.mubr.msk.bf16.mxu1 %vm2470_vm0, %v2469_v0 }
 0x26a   :  { %v213_v40 = vpop.f32.mrb[4].mxu1 }
 0x26b   :  { %v220_v41 = vsel %vm2639_vm7, %v213_v40, -1e+09  ;;  %v2052_v42 = vpop.f32.mrb[5].mxu1 }
 0x26c   :  { %v216_v43 = vpop.f32.mrb[6].mxu1  ;;  %v223_v44 = vsel %vm222_vm8, %v220_v41, -inf }
 0x26d   :  { %v221_v45 = vsel %vm2643_vm9, %v216_v43, -1e+09  ;;  %224 = vmax.xlane.f32.xlu1 %v223_v44  ;;  %v2053_v46 = vpop.f32.mrb[7].mxu1 }
 0x26e   :  { %v226_v47 = vsel %vm222_vm8, %v221_v45, -inf }
 0x26f   :  { %227 = vmax.xlane.f32.xlu0 %v226_v47 }
 0x272   :  { %v337_v48 = vpop.f32.mrb[8].mxu1 }
 0x273   :  { %v344_v49 = vsel %vm2639_vm7, %v337_v48, -1e+09  ;;  %v2064_v50 = vpop.f32.mrb[9].mxu1 }
 0x274   :  { %v340_v51 = vpop.f32.mrb[10].mxu1  ;;  %v346_v52 = vsel %vm222_vm8, %v344_v49, -inf }
 0x275   :  { %v345_v53 = vsel %vm2643_vm9, %v340_v51, -1e+09  ;;  %347 = vmax.xlane.f32.xlu1 %v346_v52  ;;  %v2065_v54 = vpop.f32.mrb[11].mxu1 }
 0x276   :  { %v349_v55 = vsel %vm222_vm8, %v345_v53, -inf }
 0x277   :  { %350 = vmax.xlane.f32.xlu0 %v349_v55 }
 0x27a   :  { %v460_v56 = vpop.f32.mrb[12].mxu1 }
 0x27b   :  { %v467_v57 = vsel %vm2639_vm7, %v460_v56, -1e+09  ;;  %v2076_v58 = vpop.f32.mrb[13].mxu1 }
 0x27c   :  { %v463_v59 = vpop.f32.mrb[14].mxu1  ;;  %v469_v60 = vsel %vm222_vm8, %v467_v57, -inf }
 0x27d   :  { %v468_v61 = vsel %vm2643_vm9, %v463_v59, -1e+09  ;;  %470 = vmax.xlane.f32.xlu1 %v469_v60  ;;  %v2077_v62 = vpop.f32.mrb[15].mxu1 }
 0x27e   :  { %v472_v63 = vsel %vm222_vm8, %v468_v61, -inf }
 0x27f   :  { %473 = vmax.xlane.f32.xlu0 %v472_v63 }
 0x282   :  { %v583_v1 = vpop.f32.mrb[16].mxu1 }
 0x283   :  { %v590_v2 = vsel %vm2639_vm7, %v583_v1, -1e+09  ;;  %v2088_v5 = vpop.f32.mrb[17].mxu1 }
 0x284   :  { %v586_v6 = vpop.f32.mrb[18].mxu1  ;;  %v592_v10 = vsel %vm222_vm8, %v590_v2, -inf }
 0x285   :  { %v591_v11 = vsel %vm2643_vm9, %v586_v6, -1e+09  ;;  %593 = vmax.xlane.f32.xlu1 %v592_v10  ;;  %v2089_v12 = vpop.f32.mrb[19].mxu1 }
 0x286   :  { %v595_v13 = vsel %vm222_vm8, %v591_v11, -inf }
 0x287   :  { %596 = vmax.xlane.f32.xlu0 %v595_v13 }
 0x296   :  { %246 = vrot.lane.b32.xlu1 %v2595_v17, %s2467_s2 }
 0x2fa   :  { %v225_v14 = vpop.xlane.xlu1 %224 }
 0x2fb   :  { %v229_v15 = vsub.f32 %v220_v41, %v225_v14 }
 0x2fc   :  { %v228_v16 = vpop.xlane.xlu0 %227 }
 0x2fd   :  { %v231_v18 = vmul.f32 1.442695, %v229_v15  ;;  %v230_v19 = vsub.f32 %v221_v45, %v228_v16 }
 0x2ff   :  { %2289 = vpow2.f32 %v231_v18  ;;  %v233_v20 = vmul.f32 1.442695, %v230_v19 }
 0x301   :  { %2291 = vpow2.f32 %v233_v20 }
 0x302   :  { %v348_v21 = vpop.xlane.xlu1 %347 }
 0x303   :  { %v352_v22 = vsub.f32 %v344_v49, %v348_v21 }
 0x304   :  { %v351_v23 = vpop.xlane.xlu0 %350 }
 0x305   :  { %v354_v24 = vmul.f32 1.442695, %v352_v22  ;;  %v353_v25 = vsub.f32 %v345_v53, %v351_v23 }
 0x307   :  { %2293 = vpow2.f32 %v354_v24  ;;  %v356_v26 = vmul.f32 1.442695, %v353_v25 }
 0x309   :  { %v2290_v27 = vpop.eup %2289  ;;  %2295 = vpow2.f32 %v356_v26 }
 0x30a   :  { %v471_v28 = vpop.xlane.xlu1 %470  ;;  %v235_v29 = vsel %vm222_vm8, %v2290_v27, 0.0 }
 0x30b   :  { %v2292_v30 = vpop.eup %2291  ;;  %v475_v31 = vsub.f32 %v467_v57, %v471_v28  ;;  %236 = vadd.xlane.f32.xlu1 %v235_v29 }
 0x30c   :  { %v474_v32 = vpop.xlane.xlu0 %473  ;;  %v238_v33 = vsel %vm222_vm8, %v2292_v30, 0.0 }
 0x30d   :  { %v477_v34 = vmul.f32 1.442695, %v475_v31  ;;  %v476_v35 = vsub.f32 %v468_v61, %v474_v32  ;;  %239 = vadd.xlane.f32.xlu0 %v238_v33 }
 0x30f   :  { %2297 = vpow2.f32 %v477_v34  ;;  %v479_v36 = vmul.f32 1.442695, %v476_v35 }
 0x311   :  { %v2294_v37 = vpop.eup %2293  ;;  %2299 = vpow2.f32 %v479_v36 }
 0x312   :  { %v594_v40 = vpop.xlane.xlu1 %593  ;;  %v358_v41 = vsel %vm222_vm8, %v2294_v37, 0.0 }
 0x313   :  { %v2296_v42 = vpop.eup %2295  ;;  %v598_v43 = vsub.f32 %v590_v2, %v594_v40  ;;  %359 = vadd.xlane.f32.xlu1 %v358_v41  ;;  %v2703_v40 = vld [vmem:[#allocation7 + $0x10] sm:$0xff]  }
 0x314   :  { %v597_v44 = vpop.xlane.xlu0 %596  ;;  %v361_v45 = vsel %vm222_vm8, %v2296_v42, 0.0  ;;  %2097 = vmatpush3.bf16.msra.mxu1 %v2703_v40 }
 0x315   :  { %v600_v46 = vmul.f32 1.442695, %v598_v43  ;;  %v599_v47 = vsub.f32 %v591_v11, %v597_v44  ;;  %362 = vadd.xlane.f32.xlu0 %v361_v45  ;;  %2098 = vmatprep.subr.bf16.mxu1 %v2469_v0  ;;  %v2276_v45 = vld [vmem:[#allocation7 + $0x18] sm:$0xff]  }
 0x316   :  { %v247_v48 = vpop.permute.xlu1 %246 }
 0x317   :  { %2301 = vpow2.f32 %v600_v46  ;;  %v602_v49 = vmul.f32 1.442695, %v599_v47  ;;  %2055 = vmatpush3.bf16.msra.mxu0 %v247_v48 }
 0x318   :  { %2066 = vmatprep.subr.bf16.mxu0 %v2469_v0  ;;  %2099 = vmatpush3.bf16.msra.mxu1 %v2276_v45 }
 0x319   :  { %v2298_v50 = vpop.eup %2297  ;;  %2303 = vpow2.f32 %v602_v49  ;;  %2112 = vmatprep.subr.bf16.mxu1 %v2469_v0 }
 0x31a   :  { %v481_v51 = vsel %vm222_vm8, %v2298_v50, 0.0 }
 0x31b   :  { %v2300_v52 = vpop.eup %2299  ;;  %482 = vadd.xlane.f32.xlu1 %v481_v51 }
 0x31c   :  { %v484_v53 = vsel %vm222_vm8, %v2300_v52, 0.0 }
 0x31d   :  { %485 = vadd.xlane.f32.xlu0 %v484_v53 }
 0x321   :  { %v2302_v54 = vpop.eup %2301 }
 0x322   :  { %v604_v55 = vsel %vm222_vm8, %v2302_v54, 0.0 }
 0x323   :  { %v2304_v56 = vpop.eup %2303  ;;  %605 = vadd.xlane.f32.xlu1 %v604_v55 }
 0x324   :  { %v607_v57 = vsel %vm222_vm8, %v2304_v56, 0.0 }
 0x325   :  { %608 = vadd.xlane.f32.xlu0 %v607_v57 }
 0x334   :  { %492 = vrot.lane.b32.xlu1 %v2595_v17, %s2479_s1 }
 0x338   :  { %615 = vrot.lane.b32.xlu1 %v2595_v17, %s2480_s26 }
 0x33b   :  { %369 = vrot.lane.b32.xlu0 %v2595_v17, %s2481_s27 }
 0x398   :  { %v237_v58 = vpop.xlane.xlu1 %236 }
 0x399   :  { %2305 = vrcp.f32 %v237_v58 }
 0x39a   :  { %v240_v59 = vpop.xlane.xlu0 %239 }
 0x39b   :  { %2307 = vrcp.f32 %v240_v59 }
 0x3a0   :  { %v360_v63 = vpop.xlane.xlu1 %359 }
 0x3a2   :  { %v363_v61 = vpop.xlane.xlu0 %362 }
 0x3a3   :  { %v2306_v60 = vpop.eup %2305  ;;  %2309 = vrcp.f32 %v363_v61 }
 0x3a4   :  { %v243_v1 = vmul.f32 %v2306_v60, %v2290_v27  ;;  %2311 = vrcp.f32 %v360_v63 }
 0x3a5   :  { %v2308_v62 = vpop.eup %2307 }
 0x3a6   :  { %v244_v2 = vmul.f32 %v2308_v62, %v2292_v30 }
 0x3a8   :  { %v245_v5 = vpack.c.bf16 %v244_v2, %v243_v1  ;;  %v483_v17 = vpop.xlane.xlu1 %482 }
 0x3aa   :  { %2057 = vmatmul.mubr.msk.bf16.vlgmr.msra.gmra.mrb[0].mxu0 %vm222_vm8, %v245_v5  ;;  %v486_v6 = vpop.xlane.xlu0 %485 }
 0x3ab   :  { %2068 = vmatprep.mubr.msk.bf16.mxu0 %vm2470_vm0, %v2469_v0  ;;  %2313 = vrcp.f32 %v486_v6 }
 0x3ac   :  { %2315 = vrcp.f32 %v483_v17 }
 0x3ad   :  { %v2310_v10 = vpop.eup %2309 }
 0x3ae   :  { %v2312_v12 = vpop.eup %2311  ;;  %v367_v13 = vmul.f32 %v2310_v10, %v2296_v42 }
 0x3af   :  { %v366_v15 = vmul.f32 %v2312_v12, %v2294_v37 }
 0x3b0   :  { %v606_v14 = vpop.xlane.xlu1 %605 }
 0x3b1   :  { %v368_v18 = vpack.c.bf16 %v367_v13, %v366_v15 }
 0x3b2   :  { %v609_v11 = vpop.xlane.xlu0 %608 }
 0x3b3   :  { %2317 = vrcp.f32 %v609_v11  ;;  %v696_v11 = vsub.s32 1, %v2583_v7 }
 0x3b4   :  { %2319 = vrcp.f32 %v606_v14  ;;  %v493_v20 = vpop.permute.xlu1 %492 }
 0x3b5   :  { %v2314_v19 = vpop.eup %2313  ;;  %v697_v12 = vrot.slane %v2591_v9, %v696_v11 }
 0x3b6   :  { %v370_v16 = vpop.permute.xlu0 %369  ;;  %v2316_v21 = vpop.eup %2315  ;;  %v490_v22 = vmul.f32 %v2314_v19, %v2300_v52 }
 0x3b7   :  { %2067 = vmatpush3.bf16.msra.mxu0 %v370_v16  ;;  %v489_v23 = vmul.f32 %v2316_v21, %v2298_v50 }
 0x3b8   :  { %2078 = vmatprep.subr.bf16.mxu0 %v2469_v0  ;;  %v616_v26 = vpop.permute.xlu1 %615 }
 0x3b9   :  { %v491_v24 = vpack.c.bf16 %v490_v22, %v489_v23 }
 0x3ba   :  { %2069 = vmatmul.mubr.msk.bf16.vlgmr.msra.gmra.mrb[4].mxu0 %vm222_vm8, %v368_v18 }
 0x3bb   :  { %2079 = vmatpush3.bf16.msra.mxu0 %v493_v20  ;;  %2080 = vmatprep.mubr.msk.bf16.mxu0 %vm2470_vm0, %v2469_v0 }
 0x3bc   :  { %2090 = vmatprep.subr.bf16.mxu0 %v2469_v0 }
 0x3bd   :  { %v2318_v25 = vpop.eup %2317 }
 0x3be   :  { %v2320_v27 = vpop.eup %2319  ;;  %v613_v28 = vmul.f32 %v2318_v25, %v2304_v56 }
 0x3bf   :  { %v612_v29 = vmul.f32 %v2320_v27, %v2302_v54 }
 0x3c1   :  { %v614_v30 = vpack.c.bf16 %v613_v28, %v612_v29 }
 0x3c2   :  { %2081 = vmatmul.mubr.msk.bf16.vlgmr.msra.gmra.mrb[8].mxu0 %vm222_vm8, %v491_v24 }
 0x3c3   :  { %2091 = vmatpush3.bf16.msra.mxu0 %v616_v26  ;;  %2092 = vmatprep.mubr.msk.bf16.mxu0 %vm2470_vm0, %v2469_v0 }
 0x3c4   :  { %2104 = vmatprep.subr.bf16.mxu0 %v2469_v0 }
 0x3ca   :  { %2093 = vmatmul.mubr.msk.bf16.vlgmr.msra.gmra.mrb[12].mxu0 %vm222_vm8, %v614_v30 }
 0x3cb   :  { %2108 = vmatprep.mubr.msk.bf16.mxu0 %vm2470_vm0, %v2469_v0 }
 0x47d   :  { %v286_v31 = vpop.f32.mrb[0].mxu0 }
 0x47e   :  { %v2058_v32 = vpop.f32.mrb[1].mxu0 }
 0x47f   :  { %v289_v33 = vpop.f32.mrb[2].mxu0 }
 0x480   :  { %v2059_v34 = vpop.f32.mrb[3].mxu0 }
 0x48d   :  { %v409_v35 = vpop.f32.mrb[4].mxu0 }
 0x48e   :  { %v2070_v36 = vpop.f32.mrb[5].mxu0 }
 0x48f   :  { %v412_v37 = vpop.f32.mrb[6].mxu0 }
 0x490   :  { %v2243_v41 = vpack.i.bf16 %v412_v37, %v409_v35  ;;  %v2071_v42 = vpop.f32.mrb[7].mxu0 }
 0x492   :  { %2244 = vrot.lane.b32.xlu0 %v2243_v41, %s2482_s28 }
 0x495   :  { %v532_v43 = vpop.f32.mrb[8].mxu0 }
 0x496   :  { %v2082_v44 = vpop.f32.mrb[9].mxu0 }
 0x497   :  { %v535_v46 = vpop.f32.mrb[10].mxu0 }
 0x498   :  { %v2248_v47 = vpack.i.bf16 %v535_v46, %v532_v43  ;;  %v2083_v48 = vpop.f32.mrb[11].mxu0  ;;  %v791_v46 = vsub.s32 3, %v2583_v7 }
 0x49a   :  { %2249 = vrot.lane.b32.xlu1 %v2248_v47, %s2483_s29 }
 0x49d   :  { %v655_v49 = vpop.f32.mrb[12].mxu0 }
 0x49e   :  { %v2094_v50 = vpop.f32.mrb[13].mxu0 }
 0x49f   :  { %v658_v51 = vpop.f32.mrb[14].mxu0 }
 0x4a0   :  { %v2253_v52 = vpack.i.bf16 %v658_v51, %v655_v49  ;;  %v2095_v53 = vpop.f32.mrb[15].mxu0 }
 0x4a2   :  { %2254 = vrot.lane.b32.xlu0 %v2253_v52, %s2484_s30  ;;  %v792_v52 = vrot.slane %v2591_v9, %v791_v46 }
 0x504   :  { %v2245_v54 = vpop.permute.xlu0 %2244 }
 0x505   :  { %v2247_v56 = vunpack.i.h.bf16 %v2245_v54  ;;  %v2246_v57 = vunpack.i.l.bf16 %v2245_v54 }
 0x507   :  { %v687_v61 = vsel %vm172_vm2, %v289_v33, %v2247_v56  ;;  %v686_v62 = vsel %vm172_vm2, %v286_v31, %v2246_v57  ;;  %v2278_v33 = vld [vmem:[#allocation7 + $0x28] sm:$0xff]   ;;  %v2279_v57 = vld [vmem:[#allocation7 + $0x30] sm:$0xff]  }
 0x50c   :  { %v2250_v55 = vpop.permute.xlu1 %2249 }
 0x50d   :  { %v2252_v58 = vunpack.i.h.bf16 %v2250_v55  ;;  %v2251_v59 = vunpack.i.l.bf16 %v2250_v55 }
 0x50f   :  { %v689_v2 = vsel %vm222_vm8, %v687_v61, %v2252_v58  ;;  %v688_v5 = vsel %vm222_vm8, %v686_v62, %v2251_v59  ;;  %v2280_v58 = vld [vmem:[#allocation7 + $0x38] sm:$0xff]   ;;  %v798_v59 = vsub.s32 4, %v2583_v7 }
 0x514   :  { %v2255_v60 = vpop.permute.xlu0 %2254 }
 0x515   :  { %v2257_v63 = vunpack.i.h.bf16 %v2255_v60  ;;  %v2256_v1 = vunpack.i.l.bf16 %v2255_v60  ;;  %v799_v60 = vrot.slane %v2591_v9, %v798_v59 }
 0x517   :  { %v692_v6 = vsel %vm690_vm10, %v689_v2, %v2257_v63  ;;  %v691_v17 = vsel %vm690_vm10, %v688_v5, %v2256_v1 }
 0x518   :  { %v693_v10 = vpack.c.bf16 %v692_v6, %v691_v17 }
 0x51a   :  { %2101 = vmatmul.mubr.msk.bf16.vlgmr.msra.gmra.mrb[20].mxu1 %vm123_vm1, %v693_v10 }
 0x51b   :  { %2120 = vmatprep.mubr.msk.bf16.mxu1 %vm2470_vm0, %v2469_v0 }
 0x5ed   :  { %v747_v13 = vpop.f32.mrb[20].mxu1 }
 0x5ee   :  { %v748_v14 = vadd.f32 %v747_v13, %v697_v12  ;;  %v2102_v15 = vpop.f32.mrb[21].mxu1 }
 0x5ef   :  { %v750_v16 = vpop.f32.mrb[22].mxu1 }
 0x5f0   :  { %v751_v18 = vadd.f32 %v750_v16, %v697_v12  ;;  %v2103_v19 = vpop.f32.mrb[23].mxu1  ;;  %v754_v20 = vadd.f32 %v748_v14, %v2569_v3  ;;  %v855_v12 = vsub.s32 5, %v2583_v7 }
 0x5f2   :  { %v756_v21 = vsel %vm123_vm1, %v754_v20, 0.0  ;;  %v755_v22 = vadd.f32 %v751_v18, %v2574_v4  ;;  %v2277_v4 = vld [vmem:[#allocation7 + $0x20] sm:$0xff]   ;;  %v856_v13 = vrot.slane %v2591_v9, %v855_v12 }
 0x5f3   :  { %757 = vadd.xlane.f32.xlu1 %v756_v21  ;;  %2113 = vmatpush3.bf16.msra.mxu1 %v2277_v4 }
 0x5f4   :  { %v759_v23 = vsel %vm123_vm1, %v755_v22, 0.0  ;;  %2114 = vmatprep.subr.bf16.mxu1 %v2469_v0 }
 0x5f5   :  { %760 = vadd.xlane.f32.xlu0 %v759_v23 }
 0x5f7   :  { %2115 = vmatpush3.bf16.msra.mxu1 %v2278_v33  ;;  %v2281_v33 = vld [vmem:[#allocation7 + $0x40] sm:$0xff]  }
 0x5f8   :  { %2116 = vmatprep.subr.bf16.mxu1 %v2469_v0 }
 0x5fb   :  { %2117 = vmatpush3.bf16.msra.mxu1 %v2279_v57 }
 0x5fc   :  { %2118 = vmatprep.subr.bf16.mxu1 %v2469_v0 }
 0x5ff   :  { %2119 = vmatpush3.bf16.msra.mxu1 %v2280_v58  ;;  %v2787_v58 = vld [vmem:[%s2963_s5 + $0x8] sm:$0xff]  ;;  %s2486_s5 = smov [#allocation8]  }
 0x600   :  { %2138 = vmatprep.subr.bf16.mxu1 %v2469_v0 }
 0x680   :  { %v758_v24 = vpop.xlane.xlu1 %757 }
 0x681   :  { %v763_v25 = vmul.f32 0.03125, %v758_v24 }
 0x682   :  { %v761_v26 = vpop.xlane.xlu0 %760 }
 0x683   :  { %v765_v27 = vsub.f32 %v754_v20, %v763_v25  ;;  %v764_v28 = vmul.f32 0.03125, %v761_v26 }
 0x685   :  { %v766_v29 = vsub.f32 %v755_v22, %v764_v28  ;;  %v767_v30 = vmul.f32 %v765_v27, %v765_v27 }
 0x687   :  { %v769_v31 = vsel %vm123_vm1, %v767_v30, 0.0  ;;  %v768_v32 = vmul.f32 %v766_v29, %v766_v29 }
 0x688   :  { %770 = vadd.xlane.f32.xlu0 %v769_v31 }
 0x689   :  { %v772_v3 = vsel %vm123_vm1, %v768_v32, 0.0 }
 0x68a   :  { %773 = vadd.xlane.f32.xlu1 %v772_v3 }
 0x69b   :  { %802 = vrot.lane.b32.xlu1 %v2276_v45, %s2472_s16 }
 0x69e   :  { %800 = vrot.lane.b32.xlu0 %v2703_v40, %s2472_s16  ;;  %v785_v40 = vsub.s32 2, %v2583_v7 }
 0x6a0   :  { %v786_v45 = vrot.slane %v2591_v9, %v785_v40 }
 0x715   :  { %v771_v34 = vpop.xlane.xlu0 %770 }
 0x716   :  { %v775_v35 = vmul.f32 0.03125, %v771_v34  ;;  %v2282_v34 = vld [vmem:[#allocation7 + $0x48] sm:$0xff]  }
 0x717   :  { %v774_v36 = vpop.xlane.xlu1 %773 }
 0x718   :  { %v777_v37 = vadd.f32 1e-05, %v775_v35  ;;  %v776_v41 = vmul.f32 0.03125, %v774_v36 }
 0x719   :  { %v801_v42 = vpop.permute.xlu0 %800 }
 0x71a   :  { %2321 = vrsqrt.f32 %v777_v37  ;;  %v778_v43 = vadd.f32 1e-05, %v776_v41  ;;  %2105 = vmatpush3.bf16.msra.mxu0 %v801_v42 }
 0x71b   :  { %v803_v44 = vpop.permute.xlu1 %802  ;;  %2106 = vmatprep.subr.bf16.mxu0 %v2469_v0 }
 0x71c   :  { %2323 = vrsqrt.f32 %v778_v43 }
 0x71e   :  { %2107 = vmatpush3.bf16.msra.mxu0 %v803_v44  ;;  %v956_v44 = vsub.s32 6, %v2583_v7 }
 0x71f   :  { %2124 = vmatprep.subr.bf16.mxu0 %v2469_v0 }
 0x724   :  { %v2322_v47 = vpop.eup %2321 }
 0x725   :  { %v781_v48 = vmul.f32 %v2322_v47, %v765_v27  ;;  %v962_v47 = vsub.s32 7, %v2583_v7 }
 0x726   :  { %v2324_v49 = vpop.eup %2323 }
 0x727   :  { %v787_v50 = vmul.f32 %v786_v45, %v781_v48  ;;  %v782_v51 = vmul.f32 %v2324_v49, %v766_v29 }
 0x729   :  { %v788_v53 = vmul.f32 %v786_v45, %v782_v51  ;;  %v793_v54 = vadd.f32 %v792_v52, %v787_v50  ;;  %v957_v45 = vrot.slane %v2591_v9, %v956_v44 }
 0x72b   :  { %v794_v55 = vadd.f32 %v792_v52, %v788_v53  ;;  %v963_v53 = vrot.slane %v2591_v9, %v962_v47  ;;  %v989_v9 = vrot.slane %v2787_v58, %v2586_v8 }
 0x72d   :  { %v795_v56 = vpack.c.bf16 %v794_v55, %v793_v54 }
 0x72f   :  { %2109 = vmatmul.mubr.msk.bf16.vlgmr.msra.gmra.mrb[16].mxu0 %vm123_vm1, %v795_v56 }
 0x730   :  { %2128 = vmatprep.mubr.msk.bf16.mxu0 %vm2470_vm0, %v2469_v0  ;;  %2125 = vmatpush3.bf16.msra.mxu0 %v2281_v33 }
 0x731   :  { %2126 = vmatprep.subr.bf16.mxu0 %v2469_v0 }
 0x734   :  { %2127 = vmatpush3.bf16.msra.mxu0 %v2282_v34 }
 0x735   :  { %2132 = vmatprep.subr.bf16.mxu0 %v2469_v0 }
 0x802   :  { %v843_v61 = vpop.f32.mrb[16].mxu0 }
 0x803   :  { %v844_v62 = vadd.f32 %v843_v61, %v799_v60  ;;  %v2110_v63 = vpop.f32.mrb[17].mxu0 }
 0x804   :  { %v846_v1 = vpop.f32.mrb[18].mxu0 }
 0x805   :  { %v847_v2 = vadd.f32 %v846_v1, %v799_v60  ;;  %v2111_v5 = vpop.f32.mrb[19].mxu0  ;;  %v850_v6 = vmax.f32 %v844_v62, 0.0 }
 0x807   :  { %v851_v17 = vmax.f32 %v847_v2, 0.0 }
 0x809   :  { %v852_v10 = vpack.c.bf16 %v851_v17, %v850_v6 }
 0x80b   :  { %2121 = vmatmul.mubr.msk.bf16.vlgmr.msra.gmra.mrb[24].mxu1 %vm881_vm11, %v852_v10 }
 0x80c   :  { %2140 = vmatprep.mubr.msk.bf16.mxu1 %vm2470_vm0, %v2469_v0 }
 0x8de   :  { %v919_v14 = vpop.f32.mrb[24].mxu1 }
 0x8df   :  { %v920_v15 = vadd.f32 %v919_v14, %v856_v13  ;;  %v2122_v16 = vpop.f32.mrb[25].mxu1 }
 0x8e0   :  { %v922_v18 = vpop.f32.mrb[26].mxu1 }
 0x8e1   :  { %v923_v19 = vadd.f32 %v922_v18, %v856_v13  ;;  %v2123_v20 = vpop.f32.mrb[27].mxu1  ;;  %v926_v21 = vadd.f32 %v920_v15, %v793_v54 }
 0x8e3   :  { %v928_v22 = vsel %vm123_vm1, %v926_v21, 0.0  ;;  %v927_v23 = vadd.f32 %v923_v19, %v794_v55 }
 0x8e4   :  { %929 = vadd.xlane.f32.xlu1 %v928_v22 }
 0x8e5   :  { %v931_v24 = vsel %vm123_vm1, %v927_v23, 0.0 }
 0x8e6   :  { %932 = vadd.xlane.f32.xlu0 %v931_v24 }
 0x971   :  { %v930_v25 = vpop.xlane.xlu1 %929 }
 0x972   :  { %v934_v26 = vmul.f32 0.03125, %v930_v25 }
 0x973   :  { %v933_v27 = vpop.xlane.xlu0 %932 }
 0x974   :  { %v936_v28 = vsub.f32 %v926_v21, %v934_v26  ;;  %v935_v29 = vmul.f32 0.03125, %v933_v27 }
 0x976   :  { %v937_v30 = vsub.f32 %v927_v23, %v935_v29  ;;  %v938_v31 = vmul.f32 %v936_v28, %v936_v28 }
 0x978   :  { %v940_v32 = vsel %vm123_vm1, %v938_v31, 0.0  ;;  %v939_v3 = vmul.f32 %v937_v30, %v937_v30 }
 0x979   :  { %941 = vadd.xlane.f32.xlu0 %v940_v32 }
 0x97a   :  { %v943_v4 = vsel %vm123_vm1, %v939_v3, 0.0 }
 0x97b   :  { %944 = vadd.xlane.f32.xlu1 %v943_v4 }
 0xa06   :  { %v942_v35 = vpop.xlane.xlu0 %941 }
 0xa07   :  { %v946_v36 = vmul.f32 0.03125, %v942_v35 }
 0xa08   :  { %v945_v37 = vpop.xlane.xlu1 %944 }
 0xa09   :  { %v948_v41 = vadd.f32 1e-05, %v946_v36  ;;  %v947_v42 = vmul.f32 0.03125, %v945_v37 }
 0xa0b   :  { %2325 = vrsqrt.f32 %v948_v41  ;;  %v949_v43 = vadd.f32 1e-05, %v947_v42 }
 0xa0d   :  { %2327 = vrsqrt.f32 %v949_v43 }
 0xa15   :  { %v2326_v48 = vpop.eup %2325 }
 0xa16   :  { %v952_v49 = vmul.f32 %v2326_v48, %v936_v28 }
 0xa17   :  { %v2328_v50 = vpop.eup %2327 }
 0xa18   :  { %v958_v51 = vmul.f32 %v957_v45, %v952_v49  ;;  %v953_v52 = vmul.f32 %v2328_v50, %v937_v30 }
 0xa1a   :  { %v959_v54 = vmul.f32 %v957_v45, %v953_v52  ;;  %v2775_v55 = vadd.f32 %v963_v53, %v958_v51 }
 0xa1c   :  { %v2777_v56 = vadd.f32 %v963_v53, %v959_v54 }
 0xa1e   :  { %v985_v57 = vpack.c.bf16 %v2777_v56, %v2775_v55 }
 0xa20   :  { %2129 = vmatmul.mubr.msk.bf16.vlgmr.msra.gmra.mrb[20].mxu0 %vm123_vm1, %v985_v57 }
 0xa21   :  { %2134 = vmatprep.mubr.msk.bf16.mxu0 %vm2470_vm0, %v2469_v0 }
 0xaf3   :  { %v1039_v60 = vpop.f32.mrb[20].mxu0 }
 0xaf4   :  { %v2130_v61 = vpop.f32.mrb[21].mxu0  ;;  %v1040_v63 = vadd.f32 %v1039_v60, %v989_v9 }
 0xaf5   :  { %v1042_v62 = vpop.f32.mrb[22].mxu0 }
 0xaf6   :  { %v1043_v1 = vadd.f32 %v1042_v62, %v989_v9  ;;  %v2131_v2 = vpop.f32.mrb[23].mxu0 }
 0xaf8   :  { %v2791_v5 = vpack.c.bf16 %v1043_v1, %v1040_v63 }
 0xafa   :  { %1171 = vrot.lane.b32.xlu1 %v2791_v5, %s2474_s18  ;;  %1048 = vrot.lane.b32.xlu0 %v2791_v5, %s2472_s16 }
 0xafe   :  { %1169 = vrot.lane.b32.xlu1 %v2791_v5, %s2471_s15  ;;  %1294 = vrot.lane.b32.xlu0 %v2791_v5, %s2473_s17 }
 0xb02   :  { %1292 = vrot.lane.b32.xlu1 %v2791_v5, %s2476_s20  ;;  %1417 = vrot.lane.b32.xlu0 %v2791_v5, %s2475_s19 }
 0xb06   :  { %1415 = vrot.lane.b32.xlu1 %v2791_v5, %s2477_s3 }
 0xb6c   :  { %v1049_v8 = vpop.permute.xlu0 %1048  ;;  %v1172_v17 = vpop.permute.xlu1 %1171 }
 0xb6d   :  { %v1054_v6 = vsel %vm172_vm2, %v1049_v8, 0  ;;  %v1177_v10 = vsel %vm172_vm2, %v1172_v17, 0 }
 0xb6e   :  { %2133 = vmatpush3.bf16.xpose.msra.mxu0 %v1054_v6 }
 0xb6f   :  { %2144 = vmatprep.subr.bf16.mxu0 %v2469_v0 }
 0xb70   :  { %v1295_v13 = vpop.permute.xlu0 %1294  ;;  %v1170_v14 = vpop.permute.xlu1 %1169 }
 0xb71   :  { %v1300_v15 = vsel %vm172_vm2, %v1295_v13, 0 }
 0xb74   :  { %v1418_v16 = vpop.permute.xlu0 %1417  ;;  %v1293_v18 = vpop.permute.xlu1 %1292 }
 0xb75   :  { %2135 = vmatmul.mubr.msk.bf16.vlgmr.msra.gmra.mrb[24].mxu0 %vm172_vm2, %v2791_v5  ;;  %v1423_v19 = vsel %vm172_vm2, %v1418_v16, 0 }
 0xb76   :  { %2145 = vmatpush3.bf16.xpose.msra.mxu0 %v1177_v10  ;;  %2146 = vmatprep.mubr.msk.bf16.mxu0 %vm2470_vm0, %v2469_v0 }
 0xb77   :  { %2156 = vmatprep.subr.bf16.mxu0 %v2469_v0 }
 0xb78   :  { %v1416_v20 = vpop.permute.xlu1 %1415 }
 0xb7d   :  { %2147 = vmatmul.mubr.msk.bf16.vlgmr.msra.gmra.mrb[28].mxu0 %vm172_vm2, %v1170_v14 }
 0xb7e   :  { %2157 = vmatpush3.bf16.xpose.msra.mxu0 %v1300_v15  ;;  %2158 = vmatprep.mubr.msk.bf16.mxu0 %vm2470_vm0, %v2469_v0 }
 0xb7f   :  { %2168 = vmatprep.subr.bf16.mxu0 %v2469_v0 }
 0xb85   :  { %2159 = vmatmul.mubr.msk.bf16.vlgmr.msra.gmra.mrb[32].mxu0 %vm172_vm2, %v1293_v18 }
 0xb86   :  { %2169 = vmatpush3.bf16.xpose.msra.mxu0 %v1423_v19  ;;  %2170 = vmatprep.mubr.msk.bf16.mxu0 %vm2470_vm0, %v2469_v0 }
 0xb87   :  { %2180 = vmatprep.subr.bf16.mxu0 %v2469_v0 }
 0xb8d   :  { %2171 = vmatmul.mubr.msk.bf16.vlgmr.msra.gmra.mrb[36].mxu0 %vm172_vm2, %v1416_v20 }
 0xb8e   :  { %2184 = vmatprep.mubr.msk.bf16.mxu0 %vm2470_vm0, %v2469_v0 }
 0xc48   :  { %v1090_v21 = vpop.f32.mrb[24].mxu0 }
 0xc49   :  { %v1097_v22 = vsel %vm2639_vm7, %v1090_v21, -1e+09  ;;  %v2136_v23 = vpop.f32.mrb[25].mxu0 }
 0xc4a   :  { %v1093_v24 = vpop.f32.mrb[26].mxu0  ;;  %v1099_v25 = vsel %vm222_vm8, %v1097_v22, -inf }
 0xc4b   :  { %v1098_v26 = vsel %vm2643_vm9, %v1093_v24, -1e+09  ;;  %1100 = vmax.xlane.f32.xlu0 %v1099_v25  ;;  %v2137_v27 = vpop.f32.mrb[27].mxu0 }
 0xc4c   :  { %v1102_v28 = vsel %vm222_vm8, %v1098_v26, -inf }
 0xc4d   :  { %1103 = vmax.xlane.f32.xlu1 %v1102_v28 }
 0xc50   :  { %v1213_v29 = vpop.f32.mrb[28].mxu0 }
 0xc51   :  { %v1220_v30 = vsel %vm2639_vm7, %v1213_v29, -1e+09  ;;  %v2148_v31 = vpop.f32.mrb[29].mxu0 }
 0xc52   :  { %v1216_v32 = vpop.f32.mrb[30].mxu0  ;;  %v1222_v3 = vsel %vm222_vm8, %v1220_v30, -inf }
 0xc53   :  { %v1221_v4 = vsel %vm2643_vm9, %v1216_v32, -1e+09  ;;  %1223 = vmax.xlane.f32.xlu0 %v1222_v3  ;;  %v2149_v33 = vpop.f32.mrb[31].mxu0 }
 0xc54   :  { %v1225_v34 = vsel %vm222_vm8, %v1221_v4, -inf }
 0xc57   :  { %1226 = vmax.xlane.f32.xlu0 %v1225_v34 }
 0xc58   :  { %v1336_v35 = vpop.f32.mrb[32].mxu0 }
 0xc59   :  { %v1343_v36 = vsel %vm2639_vm7, %v1336_v35, -1e+09  ;;  %v2160_v37 = vpop.f32.mrb[33].mxu0 }
 0xc5a   :  { %v1339_v41 = vpop.f32.mrb[34].mxu0  ;;  %v1345_v42 = vsel %vm222_vm8, %v1343_v36, -inf }
 0xc5b   :  { %v1344_v43 = vsel %vm2643_vm9, %v1339_v41, -1e+09  ;;  %1346 = vmax.xlane.f32.xlu1 %v1345_v42  ;;  %v2161_v45 = vpop.f32.mrb[35].mxu0 }
 0xc5c   :  { %v1348_v48 = vsel %vm222_vm8, %v1344_v43, -inf }
 0xc5d   :  { %1349 = vmax.xlane.f32.xlu0 %v1348_v48 }
 0xc60   :  { %v1459_v49 = vpop.f32.mrb[36].mxu0 }
 0xc61   :  { %v1466_v50 = vsel %vm2639_vm7, %v1459_v49, -1e+09  ;;  %v2172_v51 = vpop.f32.mrb[37].mxu0 }
 0xc62   :  { %v1462_v52 = vpop.f32.mrb[38].mxu0  ;;  %v1468_v53 = vsel %vm222_vm8, %v1466_v50, -inf }
 0xc63   :  { %v1467_v54 = vsel %vm2643_vm9, %v1462_v52, -1e+09  ;;  %1469 = vmax.xlane.f32.xlu1 %v1468_v53  ;;  %v2173_v57 = vpop.f32.mrb[39].mxu0 }
 0xc64   :  { %v1471_v9 = vsel %vm222_vm8, %v1467_v54, -inf }
 0xc65   :  { %1472 = vmax.xlane.f32.xlu0 %v1471_v9 }
 0xc74   :  { %1122 = vrot.lane.b32.xlu1 %v2791_v5, %s2467_s2  ;;  %s1924_s2 = sshll.u32 %s2486_s5, 4  ;;  %s1925_s2 = int_to_ptr.vmem [resolvable:$true] %s1924_s2 }
 0xc75   :  { %s2436_s24 = scalar_lea.vmem %s1925_s2, 32  ;;  %p2441_p11 = scmp.lt.s32.totalorder %s1925_s2, %s1925_s2 }
 0xc76   :  { %p2437_p10 = scmp.ne.s32.totalorder %s1925_s2, %s2436_s24  ;;  %p2442_p12 = scmp.lt.s32.totalorder %s2436_s24, %s2436_s24 }
 0xc78   :  { %p2443_p13 = por %p2442_p12, %p2441_p11 }
 0xc7a   :  { %p2444_p0 = pnand %p2443_p13, %p2437_p10 }
 0xcd8   :  { %v1101_v60 = vpop.xlane.xlu0 %1100 }
 0xcd9   :  { %v1105_v61 = vsub.f32 %v1097_v22, %v1101_v60 }
 0xcda   :  { %v1104_v62 = vpop.xlane.xlu1 %1103 }
 0xcdb   :  { %v1107_v38 = vmul.f32 1.442695, %v1105_v61  ;;  %v1106_v63 = vsub.f32 %v1098_v26, %v1104_v62 }
 0xcdd   :  { %2329 = vpow2.f32 %v1107_v38  ;;  %v1109_v1 = vmul.f32 1.442695, %v1106_v63 }
 0xcdf   :  { %2331 = vpow2.f32 %v1109_v1 }
 0xce0   :  { %v1224_v2 = vpop.xlane.xlu0 %1223 }
 0xce1   :  { %v1228_v8 = vsub.f32 %v1220_v30, %v1224_v2 }
 0xce3   :  { %v1230_v39 = vmul.f32 1.442695, %v1228_v8 }
 0xce4   :  { %v1227_v6 = vpop.xlane.xlu0 %1226 }
 0xce5   :  { %2333 = vpow2.f32 %v1230_v39  ;;  %v1229_v17 = vsub.f32 %v1221_v4, %v1227_v6 }
 0xce7   :  { %v2330_v10 = vpop.eup %2329  ;;  %v1232_v13 = vmul.f32 1.442695, %v1229_v17 }
 0xce8   :  { %v1347_v14 = vpop.xlane.xlu1 %1346  ;;  %v1111_v15 = vsel %vm222_vm8, %v2330_v10, 0.0 }
 0xce9   :  { %v2332_v16 = vpop.eup %2331  ;;  %2335 = vpow2.f32 %v1232_v13  ;;  %v1351_v18 = vsub.f32 %v1343_v36, %v1347_v14  ;;  %1112 = vadd.xlane.f32.xlu1 %v1111_v15 }
 0xcea   :  { %v1350_v19 = vpop.xlane.xlu0 %1349  ;;  %v1114_v20 = vsel %vm222_vm8, %v2332_v16, 0.0 }
 0xceb   :  { %v1353_v21 = vmul.f32 1.442695, %v1351_v18  ;;  %v1352_v22 = vsub.f32 %v1344_v43, %v1350_v19  ;;  %1115 = vadd.xlane.f32.xlu0 %v1114_v20 }
 0xced   :  { %2337 = vpow2.f32 %v1353_v21  ;;  %v1355_v23 = vmul.f32 1.442695, %v1352_v22 }
 0xcef   :  { %v2334_v24 = vpop.eup %2333  ;;  %2339 = vpow2.f32 %v1355_v23 }
 0xcf0   :  { %v1470_v25 = vpop.xlane.xlu1 %1469  ;;  %v1234_v26 = vsel %vm222_vm8, %v2334_v24, 0.0 }
 0xcf1   :  { %v1474_v27 = vsub.f32 %v1466_v50, %v1470_v25  ;;  %1235 = vadd.xlane.f32.xlu1 %v1234_v26 }
 0xcf2   :  { %v1473_v28 = vpop.xlane.xlu0 %1472 }
 0xcf3   :  { %v2336_v29 = vpop.eup %2335  ;;  %v1476_v30 = vmul.f32 1.442695, %v1474_v27  ;;  %v1475_v31 = vsub.f32 %v1467_v54, %v1473_v28 }
 0xcf4   :  { %v1123_v32 = vpop.permute.xlu1 %1122  ;;  %v1237_v3 = vsel %vm222_vm8, %v2336_v29, 0.0 }
 0xcf5   :  { %2341 = vpow2.f32 %v1476_v30  ;;  %v1478_v4 = vmul.f32 1.442695, %v1475_v31  ;;  %2139 = vmatpush3.bf16.msra.mxu1 %v1123_v32  ;;  %1238 = vadd.xlane.f32.xlu0 %v1237_v3 }
 0xcf6   :  { %2150 = vmatprep.subr.bf16.mxu1 %v2469_v0 }
 0xcf7   :  { %v2338_v33 = vpop.eup %2337  ;;  %2343 = vpow2.f32 %v1478_v4  ;;  %v2284_v4 = vld [vmem:[#allocation7 + $0x58] sm:$0xff]  }
 0xcf8   :  { %v1357_v34 = vsel %vm222_vm8, %v2338_v33, 0.0 }
 0xcf9   :  { %v2340_v35 = vpop.eup %2339  ;;  %1358 = vadd.xlane.f32.xlu1 %v1357_v34 }
 0xcfa   :  { %v1360_v36 = vsel %vm222_vm8, %v2340_v35, 0.0 }
 0xcfb   :  { %1361 = vadd.xlane.f32.xlu0 %v1360_v36 }
 0xcff   :  { %v2342_v37 = vpop.eup %2341 }
 0xd00   :  { %v1480_v41 = vsel %vm222_vm8, %v2342_v37, 0.0 }
 0xd01   :  { %v2344_v42 = vpop.eup %2343  ;;  %1481 = vadd.xlane.f32.xlu1 %v1480_v41 }
 0xd02   :  { %v1483_v43 = vsel %vm222_vm8, %v2344_v42, 0.0 }
 0xd03   :  { %1484 = vadd.xlane.f32.xlu0 %v1483_v43 }
 0xd12   :  { %1368 = vrot.lane.b32.xlu1 %v2791_v5, %s2479_s1 }
 0xd16   :  { %1491 = vrot.lane.b32.xlu1 %v2791_v5, %s2480_s26 }
 0xd19   :  { %1245 = vrot.lane.b32.xlu0 %v2791_v5, %s2481_s27 }
 0xd76   :  { %v1113_v45 = vpop.xlane.xlu1 %1112 }
 0xd77   :  { %2345 = vrcp.f32 %v1113_v45 }
 0xd78   :  { %v1116_v48 = vpop.xlane.xlu0 %1115 }
 0xd79   :  { %2347 = vrcp.f32 %v1116_v48 }
 0xd7e   :  { %v1236_v54 = vpop.xlane.xlu1 %1235 }
 0xd81   :  { %v2346_v49 = vpop.eup %2345 }
 0xd82   :  { %v1239_v50 = vpop.xlane.xlu0 %1238  ;;  %v1119_v52 = vmul.f32 %v2346_v49, %v2330_v10 }
 0xd83   :  { %v2348_v51 = vpop.eup %2347  ;;  %2349 = vrcp.f32 %v1239_v50 }
 0xd84   :  { %v1120_v53 = vmul.f32 %v2348_v51, %v2332_v16  ;;  %2351 = vrcp.f32 %v1236_v54 }
 0xd86   :  { %v1121_v57 = vpack.c.bf16 %v1120_v53, %v1119_v52  ;;  %v1359_v5 = vpop.xlane.xlu1 %1358 }
 0xd88   :  { %2141 = vmatmul.mubr.msk.bf16.vlgmr.msra.gmra.mrb[28].mxu1 %vm222_vm8, %v1121_v57  ;;  %v1362_v9 = vpop.xlane.xlu0 %1361 }
 0xd89   :  { %2152 = vmatprep.mubr.msk.bf16.mxu1 %vm2470_vm0, %v2469_v0  ;;  %2353 = vrcp.f32 %v1362_v9 }
 0xd8a   :  { %2355 = vrcp.f32 %v1359_v5 }
 0xd8d   :  { %v2350_v60 = vpop.eup %2349 }
 0xd8e   :  { %v2352_v62 = vpop.eup %2351  ;;  %v1243_v38 = vmul.f32 %v2350_v60, %v2336_v29  ;;  %v1482_v63 = vpop.xlane.xlu1 %1481  ;;  %v2884_v29 = vld [vmem:[#allocation7 + $0x50] sm:$0xff]  }
 0xd8f   :  { %v1242_v1 = vmul.f32 %v2352_v62, %v2334_v24  ;;  %2181 = vmatpush3.bf16.msra.mxu0 %v2884_v29 }
 0xd90   :  { %v1485_v61 = vpop.xlane.xlu0 %1484  ;;  %2182 = vmatprep.subr.bf16.mxu0 %v2469_v0 }
 0xd91   :  { %2357 = vrcp.f32 %v1485_v61  ;;  %v1244_v8 = vpack.c.bf16 %v1243_v38, %v1242_v1  ;;  %v1572_v1 = vrot.slane %v2787_v58, %v696_v11 }
 0xd92   :  { %2359 = vrcp.f32 %v1482_v63  ;;  %v1369_v6 = vpop.permute.xlu1 %1368 }
 0xd93   :  { %v2354_v39 = vpop.eup %2353  ;;  %2183 = vmatpush3.bf16.msra.mxu0 %v2284_v4 }
 0xd94   :  { %v1246_v2 = vpop.permute.xlu0 %1245  ;;  %v2356_v17 = vpop.eup %2355  ;;  %v1366_v10 = vmul.f32 %v2354_v39, %v2340_v35  ;;  %2196 = vmatprep.subr.bf16.mxu0 %v2469_v0 }
 0xd95   :  { %2151 = vmatpush3.bf16.msra.mxu1 %v1246_v2  ;;  %v1365_v13 = vmul.f32 %v2356_v17, %v2338_v33 }
 0xd96   :  { %2162 = vmatprep.subr.bf16.mxu1 %v2469_v0  ;;  %v1492_v16 = vpop.permute.xlu1 %1491 }
 0xd97   :  { %v1367_v14 = vpack.c.bf16 %v1366_v10, %v1365_v13 }
 0xd98   :  { %2153 = vmatmul.mubr.msk.bf16.vlgmr.msra.gmra.mrb[32].mxu1 %vm222_vm8, %v1244_v8 }
 0xd99   :  { %2163 = vmatpush3.bf16.msra.mxu1 %v1369_v6  ;;  %2164 = vmatprep.mubr.msk.bf16.mxu1 %vm2470_vm0, %v2469_v0 }
 0xd9a   :  { %2174 = vmatprep.subr.bf16.mxu1 %v2469_v0 }
 0xd9b   :  { %v2358_v15 = vpop.eup %2357 }
 0xd9c   :  { %v2360_v18 = vpop.eup %2359  ;;  %v1489_v19 = vmul.f32 %v2358_v15, %v2344_v42 }
 0xd9d   :  { %v1488_v20 = vmul.f32 %v2360_v18, %v2342_v37 }
 0xd9f   :  { %v1490_v21 = vpack.c.bf16 %v1489_v19, %v1488_v20 }
 0xda0   :  { %2165 = vmatmul.mubr.msk.bf16.vlgmr.msra.gmra.mrb[36].mxu1 %vm222_vm8, %v1367_v14 }
 0xda1   :  { %2175 = vmatpush3.bf16.msra.mxu1 %v1492_v16  ;;  %2176 = vmatprep.mubr.msk.bf16.mxu1 %vm2470_vm0, %v2469_v0 }
 0xda2   :  { %2188 = vmatprep.subr.bf16.mxu1 %v2469_v0 }
 0xda8   :  { %2177 = vmatmul.mubr.msk.bf16.vlgmr.msra.gmra.mrb[40].mxu1 %vm222_vm8, %v1490_v21 }
 0xda9   :  { %2192 = vmatprep.mubr.msk.bf16.mxu1 %vm2470_vm0, %v2469_v0 }
 0xe5b   :  { %v1162_v22 = vpop.f32.mrb[28].mxu1 }
 0xe5c   :  { %v2142_v23 = vpop.f32.mrb[29].mxu1 }
 0xe5d   :  { %v1165_v24 = vpop.f32.mrb[30].mxu1 }
 0xe5e   :  { %v2143_v25 = vpop.f32.mrb[31].mxu1 }
 0xe6b   :  { %v1285_v26 = vpop.f32.mrb[32].mxu1 }
 0xe6c   :  { %v2154_v27 = vpop.f32.mrb[33].mxu1 }
 0xe6d   :  { %v1288_v28 = vpop.f32.mrb[34].mxu1 }
 0xe6e   :  { %v2258_v30 = vpack.i.bf16 %v1288_v28, %v1285_v26  ;;  %v2155_v31 = vpop.f32.mrb[35].mxu1  ;;  %v2286_v26 = vld [vmem:[#allocation7 + $0x68] sm:$0xff]  }
 0xe70   :  { %2259 = vrot.lane.b32.xlu0 %v2258_v30, %s2482_s28 }
 0xe73   :  { %v1408_v32 = vpop.f32.mrb[36].mxu1 }
 0xe74   :  { %v2166_v3 = vpop.f32.mrb[37].mxu1 }
 0xe75   :  { %v1411_v33 = vpop.f32.mrb[38].mxu1 }
 0xe76   :  { %v2263_v34 = vpack.i.bf16 %v1411_v33, %v1408_v32  ;;  %v2167_v35 = vpop.f32.mrb[39].mxu1 }
 0xe78   :  { %2264 = vrot.lane.b32.xlu1 %v2263_v34, %s2483_s29 }
 0xe7b   :  { %v1531_v36 = vpop.f32.mrb[40].mxu1 }
 0xe7c   :  { %v2178_v37 = vpop.f32.mrb[41].mxu1 }
 0xe7d   :  { %v1534_v41 = vpop.f32.mrb[42].mxu1 }
 0xe7e   :  { %v2268_v42 = vpack.i.bf16 %v1534_v41, %v1531_v36  ;;  %v2179_v43 = vpop.f32.mrb[43].mxu1 }
 0xe80   :  { %2269 = vrot.lane.b32.xlu0 %v2268_v42, %s2484_s30  ;;  %v1666_v42 = vrot.slane %v2787_v58, %v791_v46 }
 0xee2   :  { %v2260_v45 = vpop.permute.xlu0 %2259 }
 0xee3   :  { %v2262_v49 = vunpack.i.h.bf16 %v2260_v45  ;;  %v2261_v50 = vunpack.i.l.bf16 %v2260_v45 }
 0xee5   :  { %v1563_v54 = vsel %vm172_vm2, %v1165_v24, %v2262_v49  ;;  %v1562_v57 = vsel %vm172_vm2, %v1162_v22, %v2261_v50  ;;  %v2287_v50 = vld [vmem:[#allocation7 + $0x70] sm:$0xff]  }
 0xeea   :  { %v2265_v48 = vpop.permute.xlu1 %2264 }
 0xeeb   :  { %v2267_v51 = vunpack.i.h.bf16 %v2265_v48  ;;  %v2266_v52 = vunpack.i.l.bf16 %v2265_v48 }
 0xeed   :  { %v1565_v60 = vsel %vm222_vm8, %v1563_v54, %v2267_v51  ;;  %v1564_v61 = vsel %vm222_vm8, %v1562_v57, %v2266_v52  ;;  %v1673_v51 = vrot.slane %v2787_v58, %v798_v59 }
 0xef2   :  { %v2270_v53 = vpop.permute.xlu0 %2269 }
 0xef3   :  { %v2272_v9 = vunpack.i.h.bf16 %v2270_v53  ;;  %v2271_v5 = vunpack.i.l.bf16 %v2270_v53 }
 0xef5   :  { %v1567_v62 = vsel %vm690_vm10, %v1565_v60, %v2272_v9  ;;  %v1566_v38 = vsel %vm690_vm10, %v1564_v61, %v2271_v5 }
 0xef6   :  { %v1568_v63 = vpack.c.bf16 %v1567_v62, %v1566_v38  ;;  %v1730_v62 = vrot.slane %v2787_v58, %v855_v12 }
 0xef8   :  { %2185 = vmatmul.mubr.msk.bf16.vlgmr.msra.gmra.mrb[40].mxu0 %vm123_vm1, %v1568_v63 }
 0xef9   :  { %2204 = vmatprep.mubr.msk.bf16.mxu0 %vm2470_vm0, %v2469_v0 }
 0xfcb   :  { %v1622_v2 = vpop.f32.mrb[40].mxu0 }
 0xfcc   :  { %v1623_v8 = vadd.f32 %v1622_v2, %v1572_v1  ;;  %v2186_v39 = vpop.f32.mrb[41].mxu0 }
 0xfcd   :  { %v1625_v6 = vpop.f32.mrb[42].mxu0 }
 0xfce   :  { %v1626_v17 = vadd.f32 %v1625_v6, %v1572_v1  ;;  %v2187_v10 = vpop.f32.mrb[43].mxu0  ;;  %v1629_v13 = vadd.f32 %v1623_v8, %v2775_v55 }
 0xfd0   :  { %v1631_v14 = vsel %vm123_vm1, %v1629_v13, 0.0  ;;  %v1630_v15 = vadd.f32 %v1626_v17, %v2777_v56  ;;  %v2285_v56 = vld [vmem:[#allocation7 + $0x60] sm:$0xff]  }
 0xfd1   :  { %1632 = vadd.xlane.f32.xlu1 %v1631_v14  ;;  %2197 = vmatpush3.bf16.msra.mxu0 %v2285_v56 }
 0xfd2   :  { %v1634_v16 = vsel %vm123_vm1, %v1630_v15, 0.0  ;;  %2198 = vmatprep.subr.bf16.mxu0 %v2469_v0 }
 0xfd3   :  { %1635 = vadd.xlane.f32.xlu0 %v1634_v16 }
 0xfd5   :  { %2199 = vmatpush3.bf16.msra.mxu0 %v2286_v26 }
 0xfd6   :  { %2200 = vmatprep.subr.bf16.mxu0 %v2469_v0 }
 0xfd9   :  { %2201 = vmatpush3.bf16.msra.mxu0 %v2287_v50 }
 0xfda   :  { %2202 = vmatprep.subr.bf16.mxu0 %v2469_v0 }
0x105e   :  { %v1633_v18 = vpop.xlane.xlu1 %1632 }
0x105f   :  { %v1637_v19 = vmul.f32 0.03125, %v1633_v18 }
0x1060   :  { %v1636_v20 = vpop.xlane.xlu0 %1635 }
0x1061   :  { %v1639_v11 = vsub.f32 %v1629_v13, %v1637_v19  ;;  %v1638_v21 = vmul.f32 0.03125, %v1636_v20 }
0x1063   :  { %v1640_v22 = vsub.f32 %v1630_v15, %v1638_v21  ;;  %v1641_v23 = vmul.f32 %v1639_v11, %v1639_v11 }
0x1065   :  { %v1643_v24 = vsel %vm123_vm1, %v1641_v23, 0.0  ;;  %v1642_v25 = vmul.f32 %v1640_v22, %v1640_v22 }
0x1066   :  { %1644 = vadd.xlane.f32.xlu0 %v1643_v24 }
0x1067   :  { %v1646_v55 = vsel %vm123_vm1, %v1642_v25, 0.0 }
0x1068   :  { %1647 = vadd.xlane.f32.xlu1 %v1646_v55 }
0x1079   :  { %1676 = vrot.lane.b32.xlu1 %v2284_v4, %s2472_s16 }
0x107c   :  { %1674 = vrot.lane.b32.xlu0 %v2884_v29, %s2472_s16  ;;  %v1660_v29 = vrot.slane %v2787_v58, %v785_v40  ;;  %v2288_v40 = vld [vmem:[#allocation7 + $0x78] sm:$0xff]  }
0x107d   :  { %2203 = vmatpush3.bf16.msra.mxu0 %v2288_v40 }
0x10f3   :  { %v1645_v27 = vpop.xlane.xlu0 %1644 }
0x10f4   :  { %v1649_v28 = vmul.f32 0.03125, %v1645_v27  ;;  %v1830_v27 = vrot.slane %v2787_v58, %v956_v44 }
0x10f5   :  { %v1648_v30 = vpop.xlane.xlu1 %1647 }
0x10f6   :  { %v1651_v31 = vadd.f32 1e-05, %v1649_v28  ;;  %v1650_v32 = vmul.f32 0.03125, %v1648_v30 }
0x10f7   :  { %v1675_v3 = vpop.permute.xlu0 %1674 }
0x10f8   :  { %2361 = vrsqrt.f32 %v1651_v31  ;;  %v1652_v33 = vadd.f32 1e-05, %v1650_v32  ;;  %2189 = vmatpush3.bf16.msra.mxu1 %v1675_v3 }
0x10f9   :  { %v1677_v4 = vpop.permute.xlu1 %1676  ;;  %2190 = vmatprep.subr.bf16.mxu1 %v2469_v0 }
0x10fa   :  { %2363 = vrsqrt.f32 %v1652_v33  ;;  %v1836_v33 = vrot.slane %v2787_v58, %v962_v47 }
0x10fc   :  { %2191 = vmatpush3.bf16.msra.mxu1 %v1677_v4 }
0x1102   :  { %v2362_v34 = vpop.eup %2361 }
0x1103   :  { %v1655_v35 = vmul.f32 %v2362_v34, %v1639_v11 }
0x1104   :  { %v2364_v36 = vpop.eup %2363 }
0x1105   :  { %v1661_v37 = vmul.f32 %v1660_v29, %v1655_v35  ;;  %v1656_v41 = vmul.f32 %v2364_v36, %v1640_v22  ;;  %v2485_v22 = vmov 0.0|0.0   ;;  %v2369_v35 = vld [vmem:[#allocation2] ss:$0 sm:$0xff] }
0x1106   :  { %2215 = vmatprep.subr.bf16.mxu0 %v2485_v22  ;;  %vm1841_vm12 = vcmp.eq.s32.totalorder %v2583_v7, %v2369_v35 }
0x1107   :  { %v1662_v43 = vmul.f32 %v1660_v29, %v1656_v41  ;;  %v1667_v45 = vadd.f32 %v1666_v42, %v1661_v37  ;;  %v1842_v37 = vsel %vm1841_vm12, 0.125, %v2469_v0 }
0x1109   :  { %v1668_v48 = vadd.f32 %v1666_v42, %v1662_v43 }
0x110b   :  { %v1669_v49 = vpack.c.bf16 %v1668_v48, %v1667_v45 }
0x110d   :  { %2193 = vmatmul.mubr.msk.bf16.vlgmr.msra.gmra.mrb[44].mxu1 %vm123_vm1, %v1669_v49 }
0x11e0   :  { %v1717_v52 = vpop.f32.mrb[44].mxu1 }
0x11e1   :  { %v1718_v53 = vadd.f32 %v1717_v52, %v1673_v51  ;;  %v2194_v54 = vpop.f32.mrb[45].mxu1 }
0x11e2   :  { %v1720_v46 = vpop.f32.mrb[46].mxu1 }
0x11e3   :  { %v1721_v57 = vadd.f32 %v1720_v46, %v1673_v51  ;;  %v2195_v9 = vpop.f32.mrb[47].mxu1  ;;  %v1724_v5 = vmax.f32 %v1718_v53, 0.0 }
0x11e5   :  { %v1725_v60 = vmax.f32 %v1721_v57, 0.0 }
0x11e7   :  { %v1726_v61 = vpack.c.bf16 %v1725_v60, %v1724_v5 }
0x11e9   :  { %2205 = vmatmul.mubr.msk.bf16.vlgmr.msra.gmra.mrb[44].mxu0 %vm881_vm11, %v1726_v61 }
0x11ea   :  { %2212 = vmatprep.mubr.msk.f32.mxu0 %vm2470_vm0, %v2469_v0 }
0x12bc   :  { %v1792_v38 = vpop.f32.mrb[44].mxu0 }
0x12bd   :  { %v1793_v59 = vadd.f32 %v1792_v38, %v1730_v62  ;;  %v2206_v63 = vpop.f32.mrb[45].mxu0 }
0x12be   :  { %v1795_v1 = vpop.f32.mrb[46].mxu0 }
0x12bf   :  { %v1796_v2 = vadd.f32 %v1795_v1, %v1730_v62  ;;  %v2207_v8 = vpop.f32.mrb[47].mxu0  ;;  %v1799_v39 = vadd.f32 %v1793_v59, %v1667_v45 }
0x12c1   :  { %v1801_v6 = vsel %vm123_vm1, %v1799_v39, 0.0  ;;  %v1800_v17 = vadd.f32 %v1796_v2, %v1668_v48 }
0x12c2   :  { %1802 = vadd.xlane.f32.xlu1 %v1801_v6 }
0x12c3   :  { %v1804_v10 = vsel %vm123_vm1, %v1800_v17, 0.0 }
0x12c4   :  { %1805 = vadd.xlane.f32.xlu0 %v1804_v10 }
0x134f   :  { %v1803_v13 = vpop.xlane.xlu1 %1802 }
0x1350   :  { %v1807_v14 = vmul.f32 0.03125, %v1803_v13 }
0x1351   :  { %v1806_v15 = vpop.xlane.xlu0 %1805 }
0x1352   :  { %v1809_v16 = vsub.f32 %v1799_v39, %v1807_v14  ;;  %v1808_v18 = vmul.f32 0.03125, %v1806_v15 }
0x1354   :  { %v1810_v12 = vsub.f32 %v1800_v17, %v1808_v18  ;;  %v1811_v19 = vmul.f32 %v1809_v16, %v1809_v16 }
0x1356   :  { %v1813_v20 = vsel %vm123_vm1, %v1811_v19, 0.0  ;;  %v1812_v11 = vmul.f32 %v1810_v12, %v1810_v12 }
0x1357   :  { %1814 = vadd.xlane.f32.xlu0 %v1813_v20 }
0x1358   :  { %v1816_v21 = vsel %vm123_vm1, %v1812_v11, 0.0 }
0x1359   :  { %1817 = vadd.xlane.f32.xlu1 %v1816_v21 }
0x13e4   :  { %v1815_v23 = vpop.xlane.xlu0 %1814 }
0x13e5   :  { %v1819_v24 = vmul.f32 0.03125, %v1815_v23 }
0x13e6   :  { %v1818_v25 = vpop.xlane.xlu1 %1817 }
0x13e7   :  { %v1821_v55 = vadd.f32 1e-05, %v1819_v24  ;;  %v1820_v56 = vmul.f32 0.03125, %v1818_v25 }
0x13e9   :  { %2365 = vrsqrt.f32 %v1821_v55  ;;  %v1822_v26 = vadd.f32 1e-05, %v1820_v56 }
0x13eb   :  { %2367 = vrsqrt.f32 %v1822_v26 }
0x13f3   :  { %v2366_v28 = vpop.eup %2365 }
0x13f4   :  { %v1825_v30 = vmul.f32 %v2366_v28, %v1809_v16 }
0x13f5   :  { %v2368_v31 = vpop.eup %2367 }
0x13f6   :  { %v1826_v32 = vmul.f32 %v2368_v31, %v1810_v12  ;;  %v1831_v3 = vmul.f32 %v1830_v27, %v1825_v30 }
0x13f8   :  { %v1832_v4 = vmul.f32 %v1830_v27, %v1826_v32  ;;  %v1837_v29 = vadd.f32 %v1836_v33, %v1831_v3 }
0x13fa   :  { %v1838_v34 = vadd.f32 %v1836_v33, %v1832_v4 }
0x13fc   :  { %v2216_v36 = vpack.c.bf16 %v1838_v34, %v1837_v29 }
0x13fe   :  { %2217 = vmatpush3.bf16.msra.mxu0 %v2216_v36 }
0x1401   :  { %2213 = vmatmul.mubr.msk.f32.vlgmr.msra.gmra.mrb[48].mxu0 %vm222_vm8, %v1842_v37 }
0x14d4   :  { %v1912_v44 = vpop.f32.mrb[48].mxu0 }
0x14d5   :  { %v2214_v41 = vpop.f32.mrb[49].mxu0  ;;  %1917 = vst.msk [vmem:[#allocation8] sm:$0x3] %vm1916_vm13, %v1912_v44 }
0x14d6   :  { %2447 = shalt.err (!%p2444_p0)
}
0x14d7   :  { %s2448_s4 = scalar_lea.hbm %s2964_s6, 32 }
0x14d8   :  { %p2449_p1 = scmp.ne.s32.totalorder %s2964_s6, %s2448_s4  ;;  %p2452_p2 = scmp.lt.u32.totalorder %s2448_s4, %s2964_s6 }
0x14da   :  { %p2454_p3 = pnand %p2452_p2, %p2449_p1 }
0x14dc   :  { %2457 = shalt.err (!%p2454_p3)
}
0x14dd   :  { %1927 = dma.vmem_to_hbm [thread:$0]  %s1925_s2, 32, %s2964_s6, [#allocation4]  }
0x14de   :  { %2462 = dma.done.wait [#allocation4], 32  }
0x14df   :  { %2463 = vsyncadd [#allocation4], 4294967264 }
0x14e0   :  { %1931 = vsyncpa [#allocation3], 1 }
0x14e1   :  { %1932 = vsyncpa [#allocation6], 1 }
0x14e2   :  { %1933 = vsyncpa [#allocation4], 1 }

</bundles_post_ra>
